<compile_context>
chip_gen: v7x
topology: tpu7x:2x2x1
jax: 0.10.0
libtpu: 0.0.40
codegen_flags: <defaults>
</compile_context>

<pallas_src>
import functools

import jax
import jax.numpy as jnp
from jax.experimental import pallas as pl
from jax.experimental.pallas import tpu as pltpu

EPS = 1e-5
HIDDEN_DIMS = [1024, 512, 256, 256, 128, 64]
N_LAYERS = len(HIDDEN_DIMS) + 1      # 6 hidden linears + output linear
N_BN = 5                             # BatchNorm after hidden1..hidden5 only
LANE = 128


def _round_up(n, m):
    return ((n + m - 1) // m) * m


def _device_kind():
    try:
        return jax.devices()[0].device_kind.lower()
    except Exception:
        return ""


def _supports_bf16_vpu():
    """bf16 VPU/EUP exists on v6e (Trillium) and v7x (Ironwood); not on v5e/older."""
    kind = _device_kind()
    return any(tag in kind for tag in ("v6", "v7", "trillium", "ironwood"))


def _num_tensorcores_per_chip():
    """v7x has 2 TensorCores per chip; v5e/v6e have 1."""
    kind = _device_kind()
    return 2 if ("v7" in kind or "ironwood" in kind) else 1


# ----------------------------------------------------------------------------
# Kernel
# ----------------------------------------------------------------------------
def _mlp_kernel(*refs, use_bf16_act):
    """Fused forward pass. x/out are batch tiles; weights are VMEM-resident."""
    x_ref, *param_refs, out_ref = refs
    n_layers = len(param_refs) // 2

    h = x_ref[...]                               # bf16 activation tile
    for li in range(n_layers):
        w_ref = param_refs[2 * li]               # bf16 (BN already folded in)
        b_ref = param_refs[2 * li + 1]           # f32
        # bf16 MXU matmul with f32 accumulation; bias add in f32.
        y = jnp.dot(h, w_ref[...], preferred_element_type=jnp.float32) + b_ref[...]
        if li < n_layers - 1:
            if use_bf16_act:
                # v6e/v7x: bf16 EUP tanh (2x throughput, half the vreg/VMEM).
                h = jnp.tanh(y.astype(jnp.bfloat16))
            else:
                # v5e: f32 EUP tanh, then bf16 only for the next MXU pass.
                h = jnp.tanh(y).astype(jnp.bfloat16)
        else:
            h = y                                # output layer: no activation
    out_ref[...] = h.astype(out_ref.dtype)


# ----------------------------------------------------------------------------
# Parameters
# ----------------------------------------------------------------------------
def init_params(key, input_dim, output_dim):
    """Deterministic PyTorch-style init (Linear uniform bounds, nontrivial BN stats)."""
    dims = [input_dim] + HIDDEN_DIMS + [output_dim]
    params = {}
    keys = jax.random.split(key, 4 * (len(dims) - 1))
    ki = 0
    for li, (din, dout) in enumerate(zip(dims[:-1], dims[1:])):
        bound = 1.0 / (din ** 0.5)
        params[f"w{li}"] = jax.random.uniform(
            keys[ki], (din, dout), jnp.float32, -bound, bound); ki += 1
        params[f"b{li}"] = jax.random.uniform(
            keys[ki], (1, dout), jnp.float32, -bound, bound); ki += 1
        if li < N_BN:
            params[f"gamma{li}"] = 1.0 + 0.1 * jax.random.normal(
                keys[ki], (1, dout), jnp.float32); ki += 1
            params[f"beta{li}"] = 0.1 * jax.random.normal(
                keys[ki], (1, dout), jnp.float32); ki += 1
            # deterministic "running" statistics
            params[f"rmean{li}"] = jnp.full((1, dout), 0.05, jnp.float32)
            params[f"rvar{li}"] = jnp.full((1, dout), 1.2, jnp.float32)
        else:
            ki += 2
    return params


def _fold_bn(params, li):
    """Fold eval-mode BatchNorm1d (running stats) into the Linear weight/bias."""
    w = params[f"w{li}"]
    b = params[f"b{li}"]
    if li < N_BN:
        scale = params[f"gamma{li}"] / jnp.sqrt(params[f"rvar{li}"] + EPS)
        shift = params[f"beta{li}"] - params[f"rmean{li}"] * scale
        w = w * scale
        b = b * scale + shift
    return w, b


def prepare_kernel_args(params):
    """BN-folded, lane-padded, bf16-weight parameter list [w0,b0,...,w6,b6].

    Input width and every layer's output width are zero-padded up to a
    multiple of 128 lanes.  Padded columns are exact zeros -> tanh(0)=0 and
    the next layer's padded rows are zero, so results are unchanged.
    """
    args = []
    input_dim = params["w0"].shape[0]
    prev_pad = _round_up(input_dim, LANE) - input_dim   # lane-pad the input width
    for li in range(N_LAYERS):
        w, b = _fold_bn(params, li)
        if prev_pad:                               # match previous padded width
            w = jnp.pad(w, ((0, prev_pad), (0, 0)))
        dout = w.shape[1]
        out_pad = _round_up(dout, LANE) - dout
        if out_pad:
            w = jnp.pad(w, ((0, 0), (0, out_pad)))
            b = jnp.pad(b, ((0, 0), (0, out_pad)))
        prev_pad = out_pad
        args.append(w.astype(jnp.bfloat16))        # weights stream as bf16
        args.append(b.astype(jnp.float32))         # bias add stays f32
    return args


# ----------------------------------------------------------------------------
# Wrapper
# ----------------------------------------------------------------------------
def mlp_batch_forward(x, kernel_args, *, output_dim, tile_b=1024):
    batch, input_dim = x.shape
    in_dim_pad = kernel_args[0].shape[0]       # lane-padded input width (w0 rows)
    out_pad = kernel_args[-1].shape[-1]        # lane-padded output width (>= 128)

    # Stream the input as bf16, zero-padded to the lane-padded feature width.
    x = x.astype(jnp.bfloat16)
    if in_dim_pad != input_dim:
        x = jnp.pad(x, ((0, 0), (0, in_dim_pad - input_dim)))

    # Batch tiling: large tiles amortize per-grid-step overhead; on 2-TC chips
    # (v7x) keep at least 2 grid steps so the "parallel" axis shards across cores.
    batch_r8 = _round_up(batch, 8)
    tile_b = min(tile_b, batch_r8)
    cores = _num_tensorcores_per_chip()
    if cores > 1 and batch_r8 >= 2 * 8:
        per_core = _round_up(-(-batch_r8 // cores), 8)
        tile_b = min(tile_b, per_core)
    padded_batch = _round_up(batch, tile_b)
    if padded_batch != batch:
        x = jnp.pad(x, ((0, padded_batch - batch), (0, 0)))
    grid = (padded_batch // tile_b,)

    use_bf16_act = _supports_bf16_vpu()

    in_specs = [pl.BlockSpec((tile_b, in_dim_pad), lambda i: (i, 0))]
    # Weights/biases: full-array blocks with a constant block index -> DMA'd
    # once and VMEM-resident across all batch-grid iterations; single-buffered
    # since the block index never changes (no wasted double buffer).
    in_specs += [
        pl.BlockSpec(a.shape, lambda i: (0, 0), pipeline_mode=pl.Buffered(1))
        for a in kernel_args
    ]
    out_specs = pl.BlockSpec((tile_b, out_pad), lambda i: (i, 0))

    out = pl.pallas_call(
        functools.partial(_mlp_kernel, use_bf16_act=use_bf16_act),
        out_shape=jax.ShapeDtypeStruct((padded_batch, out_pad), jnp.float32),
        grid=grid,
        in_specs=in_specs,
        out_specs=out_specs,
        compiler_params=pltpu.CompilerParams(
            dimension_semantics=("parallel",),
            vmem_limit_bytes=48 * 1024 * 1024,
        ),
    )(x, *kernel_args)

    return out[:batch, :output_dim]


# ----------------------------------------------------------------------------
# References (for correctness checks)
# ----------------------------------------------------------------------------
def reference_forward(x, params):
    """Plain-JAX f32 eval-mode forward with explicit (unfolded) BatchNorm."""
    h = x.astype(jnp.float32)
    for li in range(N_LAYERS):
        h = h @ params[f"w{li}"] + params[f"b{li}"]
        if li < N_BN:
            inv = 1.0 / jnp.sqrt(params[f"rvar{li}"] + EPS)
            h = (h - params[f"rmean{li}"]) * inv * params[f"gamma{li}"] \
                + params[f"beta{li}"]
        if li < N_LAYERS - 1:
            h = jnp.tanh(h)
        # Dropout(p=0.3) is identity in eval mode.
    return h


def folded_reference_f32(x, params):
    """f32 forward using the BN-folded weights (validates the folding itself)."""
    h = x.astype(jnp.float32)
    for li in range(N_LAYERS):
        w, b = _fold_bn(params, li)
        y = h @ w + b
        h = jnp.tanh(y) if li < N_LAYERS - 1 else y
    return h


def matched_reference(x, kernel_args, output_dim, use_bf16_act):
    """Plain-JAX forward using the exact kernel params/dtypes (bf16 w/act, f32 acc)."""
    in_dim_pad = kernel_args[0].shape[0]
    h = x.astype(jnp.bfloat16)
    if in_dim_pad != x.shape[1]:
        h = jnp.pad(h, ((0, 0), (0, in_dim_pad - x.shape[1])))
    n = len(kernel_args) // 2
    for li in range(n):
        w, b = kernel_args[2 * li], kernel_args[2 * li + 1]
        y = jnp.dot(h, w, preferred_element_type=jnp.float32) + b
        if li < n - 1:
            if use_bf16_act:
                h = jnp.tanh(y.astype(jnp.bfloat16))
            else:
                h = jnp.tanh(y).astype(jnp.bfloat16)
        else:
            h = y
    return h[:, :output_dim]


# ----------------------------------------------------------------------------
if __name__ == "__main__":
    input_dim, output_dim, batch = 32, 8, 8
    key = jax.random.PRNGKey(0)
    kx, kp = jax.random.split(key)
    x = jax.random.normal(kx, (batch, input_dim), jnp.float32)

    params = init_params(kp, input_dim, output_dim)
    kernel_args = prepare_kernel_args(params)

    fwd = jax.jit(functools.partial(mlp_batch_forward, output_dim=output_dim))
    out = jax.block_until_ready(fwd(x, kernel_args))
    assert out.shape == (batch, output_dim)

    # (1) BN folding is exact (pure f32 check).
    ref = reference_forward(x, params)
    folded = folded_reference_f32(x, params)
    assert jnp.allclose(folded, ref, atol=1e-4, rtol=1e-4)

    # (2) Kernel matches a plain-JAX forward with identical params/dtypes
    #     (this is the real correctness gate).
    matched = matched_reference(x, kernel_args, output_dim, _supports_bf16_vpu())
    assert jnp.allclose(out, matched, atol=2e-2, rtol=2e-2)

    # (3) End-to-end vs. full-f32 reference (bf16 weight/activation quantization).
    assert jnp.allclose(out, ref, atol=1.5e-1, rtol=1.5e-1)

    print("KERNEL_OK")
</pallas_src>

<mosaic_0001>
module attributes {stable_mosaic.version = 11 : i64} {
  func.func @_mlp_kernel(%arg0: i32, %arg1: memref<8x128xbf16, #tpu.memory_space<vmem>>, %arg2: memref<128x1024xbf16, #tpu.memory_space<vmem>>, %arg3: memref<1x1024xf32, #tpu.memory_space<vmem>>, %arg4: memref<1024x512xbf16, #tpu.memory_space<vmem>>, %arg5: memref<1x512xf32, #tpu.memory_space<vmem>>, %arg6: memref<512x256xbf16, #tpu.memory_space<vmem>>, %arg7: memref<1x256xf32, #tpu.memory_space<vmem>>, %arg8: memref<256x256xbf16, #tpu.memory_space<vmem>>, %arg9: memref<1x256xf32, #tpu.memory_space<vmem>>, %arg10: memref<256x128xbf16, #tpu.memory_space<vmem>>, %arg11: memref<1x128xf32, #tpu.memory_space<vmem>>, %arg12: memref<128x128xbf16, #tpu.memory_space<vmem>>, %arg13: memref<1x128xf32, #tpu.memory_space<vmem>>, %arg14: memref<128x128xbf16, #tpu.memory_space<vmem>>, %arg15: memref<1x128xf32, #tpu.memory_space<vmem>>, %arg16: memref<8x128xf32, #tpu.memory_space<vmem>>) attributes {dimension_semantics = [#tpu.dimension_semantics<parallel>], iteration_bounds = array<i64: 1>, scalar_prefetch = 0 : i64, scratch_operands = 0 : i64, tpu.core_type = #tpu.core_type<tc>, window_params = [{transform_indices = @transform_0, window_bounds = array<i64: 8, 128>}, {pipeline_mode = #tpu.pipeline_mode<synchronous>, transform_indices = @transform_1, window_bounds = array<i64: 128, 1024>}, {pipeline_mode = #tpu.pipeline_mode<synchronous>, transform_indices = @transform_2, window_bounds = array<i64: 1, 1024>}, {pipeline_mode = #tpu.pipeline_mode<synchronous>, transform_indices = @transform_3, window_bounds = array<i64: 1024, 512>}, {pipeline_mode = #tpu.pipeline_mode<synchronous>, transform_indices = @transform_4, window_bounds = array<i64: 1, 512>}, {pipeline_mode = #tpu.pipeline_mode<synchronous>, transform_indices = @transform_5, window_bounds = array<i64: 512, 256>}, {pipeline_mode = #tpu.pipeline_mode<synchronous>, transform_indices = @transform_6, window_bounds = array<i64: 1, 256>}, {pipeline_mode = #tpu.pipeline_mode<synchronous>, transform_indices = @transform_7, window_bounds = array<i64: 256, 256>}, {pipeline_mode = #tpu.pipeline_mode<synchronous>, transform_indices = @transform_8, window_bounds = array<i64: 1, 256>}, {pipeline_mode = #tpu.pipeline_mode<synchronous>, transform_indices = @transform_9, window_bounds = array<i64: 256, 128>}, {pipeline_mode = #tpu.pipeline_mode<synchronous>, transform_indices = @transform_10, window_bounds = array<i64: 1, 128>}, {pipeline_mode = #tpu.pipeline_mode<synchronous>, transform_indices = @transform_11, window_bounds = array<i64: 128, 128>}, {pipeline_mode = #tpu.pipeline_mode<synchronous>, transform_indices = @transform_12, window_bounds = array<i64: 1, 128>}, {pipeline_mode = #tpu.pipeline_mode<synchronous>, transform_indices = @transform_13, window_bounds = array<i64: 128, 128>}, {pipeline_mode = #tpu.pipeline_mode<synchronous>, transform_indices = @transform_14, window_bounds = array<i64: 1, 128>}, {transform_indices = @transform_15, window_bounds = array<i64: 8, 128>}]} {
    %c0 = arith.constant 0 : index
    %c0_0 = arith.constant 0 : index
    %0 = vector.load %arg1[%c0, %c0_0] : memref<8x128xbf16, #tpu.memory_space<vmem>>, vector<8x128xbf16>
    %c0_1 = arith.constant 0 : index
    %c0_2 = arith.constant 0 : index
    %1 = vector.load %arg2[%c0_1, %c0_2] : memref<128x1024xbf16, #tpu.memory_space<vmem>>, vector<128x1024xbf16>
    %cst = arith.constant dense<0.000000e+00> : vector<8x1024xf32>
    %2 = tpu.matmul %0, %1, %cst {dimension_numbers = #tpu.dot_dimension_numbers<[1], [0], [0], [1], [0, 0, 1, 1], [], []>} : vector<8x128xbf16>, vector<128x1024xbf16>, vector<8x1024xf32> -> vector<8x1024xf32>
    %c0_3 = arith.constant 0 : index
    %c0_4 = arith.constant 0 : index
    %3 = vector.load %arg3[%c0_3, %c0_4] : memref<1x1024xf32, #tpu.memory_space<vmem>>, vector<1x1024xf32>
    %4 = vector.broadcast %3 : vector<1x1024xf32> to vector<8x1024xf32>
    %5 = arith.addf %2, %4 : vector<8x1024xf32>
    %6 = math.tanh %5 : vector<8x1024xf32>
    %7 = arith.truncf %6 : vector<8x1024xf32> to vector<8x1024xbf16>
    %c0_5 = arith.constant 0 : index
    %c0_6 = arith.constant 0 : index
    %8 = vector.load %arg4[%c0_5, %c0_6] : memref<1024x512xbf16, #tpu.memory_space<vmem>>, vector<1024x512xbf16>
    %cst_7 = arith.constant dense<0.000000e+00> : vector<8x512xf32>
    %9 = tpu.matmul %7, %8, %cst_7 {dimension_numbers = #tpu.dot_dimension_numbers<[1], [0], [0], [1], [0, 0, 1, 1], [], []>} : vector<8x1024xbf16>, vector<1024x512xbf16>, vector<8x512xf32> -> vector<8x512xf32>
    %c0_8 = arith.constant 0 : index
    %c0_9 = arith.constant 0 : index
    %10 = vector.load %arg5[%c0_8, %c0_9] : memref<1x512xf32, #tpu.memory_space<vmem>>, vector<1x512xf32>
    %11 = vector.broadcast %10 : vector<1x512xf32> to vector<8x512xf32>
    %12 = arith.addf %9, %11 : vector<8x512xf32>
    %13 = math.tanh %12 : vector<8x512xf32>
    %14 = arith.truncf %13 : vector<8x512xf32> to vector<8x512xbf16>
    %c0_10 = arith.constant 0 : index
    %c0_11 = arith.constant 0 : index
    %15 = vector.load %arg6[%c0_10, %c0_11] : memref<512x256xbf16, #tpu.memory_space<vmem>>, vector<512x256xbf16>
    %cst_12 = arith.constant dense<0.000000e+00> : vector<8x256xf32>
    %16 = tpu.matmul %14, %15, %cst_12 {dimension_numbers = #tpu.dot_dimension_numbers<[1], [0], [0], [1], [0, 0, 1, 1], [], []>} : vector<8x512xbf16>, vector<512x256xbf16>, vector<8x256xf32> -> vector<8x256xf32>
    %c0_13 = arith.constant 0 : index
    %c0_14 = arith.constant 0 : index
    %17 = vector.load %arg7[%c0_13, %c0_14] : memref<1x256xf32, #tpu.memory_space<vmem>>, vector<1x256xf32>
    %18 = vector.broadcast %17 : vector<1x256xf32> to vector<8x256xf32>
    %19 = arith.addf %16, %18 : vector<8x256xf32>
    %20 = math.tanh %19 : vector<8x256xf32>
    %21 = arith.truncf %20 : vector<8x256xf32> to vector<8x256xbf16>
    %c0_15 = arith.constant 0 : index
    %c0_16 = arith.constant 0 : index
    %22 = vector.load %arg8[%c0_15, %c0_16] : memref<256x256xbf16, #tpu.memory_space<vmem>>, vector<256x256xbf16>
    %cst_17 = arith.constant dense<0.000000e+00> : vector<8x256xf32>
    %23 = tpu.matmul %21, %22, %cst_17 {dimension_numbers = #tpu.dot_dimension_numbers<[1], [0], [0], [1], [0, 0, 1, 1], [], []>} : vector<8x256xbf16>, vector<256x256xbf16>, vector<8x256xf32> -> vector<8x256xf32>
    %c0_18 = arith.constant 0 : index
    %c0_19 = arith.constant 0 : index
    %24 = vector.load %arg9[%c0_18, %c0_19] : memref<1x256xf32, #tpu.memory_space<vmem>>, vector<1x256xf32>
    %25 = vector.broadcast %24 : vector<1x256xf32> to vector<8x256xf32>
    %26 = arith.addf %23, %25 : vector<8x256xf32>
    %27 = math.tanh %26 : vector<8x256xf32>
    %28 = arith.truncf %27 : vector<8x256xf32> to vector<8x256xbf16>
    %c0_20 = arith.constant 0 : index
    %c0_21 = arith.constant 0 : index
    %29 = vector.load %arg10[%c0_20, %c0_21] : memref<256x128xbf16, #tpu.memory_space<vmem>>, vector<256x128xbf16>
    %cst_22 = arith.constant dense<0.000000e+00> : vector<8x128xf32>
    %30 = tpu.matmul %28, %29, %cst_22 {dimension_numbers = #tpu.dot_dimension_numbers<[1], [0], [0], [1], [0, 0, 1, 1], [], []>} : vector<8x256xbf16>, vector<256x128xbf16>, vector<8x128xf32> -> vector<8x128xf32>
    %c0_23 = arith.constant 0 : index
    %c0_24 = arith.constant 0 : index
    %31 = vector.load %arg11[%c0_23, %c0_24] : memref<1x128xf32, #tpu.memory_space<vmem>>, vector<1x128xf32>
    %32 = vector.broadcast %31 : vector<1x128xf32> to vector<8x128xf32>
    %33 = arith.addf %30, %32 : vector<8x128xf32>
    %34 = math.tanh %33 : vector<8x128xf32>
    %35 = arith.truncf %34 : vector<8x128xf32> to vector<8x128xbf16>
    %c0_25 = arith.constant 0 : index
    %c0_26 = arith.constant 0 : index
    %36 = vector.load %arg12[%c0_25, %c0_26] : memref<128x128xbf16, #tpu.memory_space<vmem>>, vector<128x128xbf16>
    %cst_27 = arith.constant dense<0.000000e+00> : vector<8x128xf32>
    %37 = tpu.matmul %35, %36, %cst_27 {dimension_numbers = #tpu.dot_dimension_numbers<[1], [0], [0], [1], [0, 0, 1, 1], [], []>} : vector<8x128xbf16>, vector<128x128xbf16>, vector<8x128xf32> -> vector<8x128xf32>
    %c0_28 = arith.constant 0 : index
    %c0_29 = arith.constant 0 : index
    %38 = vector.load %arg13[%c0_28, %c0_29] : memref<1x128xf32, #tpu.memory_space<vmem>>, vector<1x128xf32>
    %39 = vector.broadcast %38 : vector<1x128xf32> to vector<8x128xf32>
    %40 = arith.addf %37, %39 : vector<8x128xf32>
    %41 = math.tanh %40 : vector<8x128xf32>
    %42 = arith.truncf %41 : vector<8x128xf32> to vector<8x128xbf16>
    %c0_30 = arith.constant 0 : index
    %c0_31 = arith.constant 0 : index
    %43 = vector.load %arg14[%c0_30, %c0_31] : memref<128x128xbf16, #tpu.memory_space<vmem>>, vector<128x128xbf16>
    %cst_32 = arith.constant dense<0.000000e+00> : vector<8x128xf32>
    %44 = tpu.matmul %42, %43, %cst_32 {dimension_numbers = #tpu.dot_dimension_numbers<[1], [0], [0], [1], [0, 0, 1, 1], [], []>} : vector<8x128xbf16>, vector<128x128xbf16>, vector<8x128xf32> -> vector<8x128xf32>
    %c0_33 = arith.constant 0 : index
    %c0_34 = arith.constant 0 : index
    %45 = vector.load %arg15[%c0_33, %c0_34] : memref<1x128xf32, #tpu.memory_space<vmem>>, vector<1x128xf32>
    %46 = vector.broadcast %45 : vector<1x128xf32> to vector<8x128xf32>
    %47 = arith.addf %44, %46 : vector<8x128xf32>
    %c0_35 = arith.constant 0 : index
    %c0_36 = arith.constant 0 : index
    %48 = vector.load %arg16[%c0_35, %c0_36] : memref<8x128xf32, #tpu.memory_space<vmem>>, vector<8x128xf32>
    tpu.vector_store %arg16[%c0_35, %c0_36], %47 {strides = array<i32>} : memref<8x128xf32, #tpu.memory_space<vmem>>, vector<8x128xf32>,
    return
  }
  func.func @transform_0(%arg0: i32) -> (i32, i32) {
    %c0_i32 = arith.constant 0 : i32
    %c0_i32_0 = arith.constant 0 : i32
    return %arg0, %c0_i32 : i32, i32
  }
  func.func @transform_1(%arg0: i32) -> (i32, i32) {
    %c0_i32 = arith.constant 0 : i32
    %c0_i32_0 = arith.constant 0 : i32
    %c0_i32_1 = arith.constant 0 : i32
    return %c0_i32, %c0_i32_0 : i32, i32
  }
  func.func @transform_2(%arg0: i32) -> (i32, i32) {
    %c0_i32 = arith.constant 0 : i32
    %c0_i32_0 = arith.constant 0 : i32
    %c0_i32_1 = arith.constant 0 : i32
    return %c0_i32, %c0_i32_0 : i32, i32
  }
  func.func @transform_3(%arg0: i32) -> (i32, i32) {
    %c0_i32 = arith.constant 0 : i32
    %c0_i32_0 = arith.constant 0 : i32
    %c0_i32_1 = arith.constant 0 : i32
    return %c0_i32, %c0_i32_0 : i32, i32
  }
  func.func @transform_4(%arg0: i32) -> (i32, i32) {
    %c0_i32 = arith.constant 0 : i32
    %c0_i32_0 = arith.constant 0 : i32
    %c0_i32_1 = arith.constant 0 : i32
    return %c0_i32, %c0_i32_0 : i32, i32
  }
  func.func @transform_5(%arg0: i32) -> (i32, i32) {
    %c0_i32 = arith.constant 0 : i32
    %c0_i32_0 = arith.constant 0 : i32
    %c0_i32_1 = arith.constant 0 : i32
    return %c0_i32, %c0_i32_0 : i32, i32
  }
  func.func @transform_6(%arg0: i32) -> (i32, i32) {
    %c0_i32 = arith.constant 0 : i32
    %c0_i32_0 = arith.constant 0 : i32
    %c0_i32_1 = arith.constant 0 : i32
    return %c0_i32, %c0_i32_0 : i32, i32
  }
  func.func @transform_7(%arg0: i32) -> (i32, i32) {
    %c0_i32 = arith.constant 0 : i32
    %c0_i32_0 = arith.constant 0 : i32
    %c0_i32_1 = arith.constant 0 : i32
    return %c0_i32, %c0_i32_0 : i32, i32
  }
  func.func @transform_8(%arg0: i32) -> (i32, i32) {
    %c0_i32 = arith.constant 0 : i32
    %c0_i32_0 = arith.constant 0 : i32
    %c0_i32_1 = arith.constant 0 : i32
    return %c0_i32, %c0_i32_0 : i32, i32
  }
  func.func @transform_9(%arg0: i32) -> (i32, i32) {
    %c0_i32 = arith.constant 0 : i32
    %c0_i32_0 = arith.constant 0 : i32
    %c0_i32_1 = arith.constant 0 : i32
    return %c0_i32, %c0_i32_0 : i32, i32
  }
  func.func @transform_10(%arg0: i32) -> (i32, i32) {
    %c0_i32 = arith.constant 0 : i32
    %c0_i32_0 = arith.constant 0 : i32
    %c0_i32_1 = arith.constant 0 : i32
    return %c0_i32, %c0_i32_0 : i32, i32
  }
  func.func @transform_11(%arg0: i32) -> (i32, i32) {
    %c0_i32 = arith.constant 0 : i32
    %c0_i32_0 = arith.constant 0 : i32
    %c0_i32_1 = arith.constant 0 : i32
    return %c0_i32, %c0_i32_0 : i32, i32
  }
  func.func @transform_12(%arg0: i32) -> (i32, i32) {
    %c0_i32 = arith.constant 0 : i32
    %c0_i32_0 = arith.constant 0 : i32
    %c0_i32_1 = arith.constant 0 : i32
    return %c0_i32, %c0_i32_0 : i32, i32
  }
  func.func @transform_13(%arg0: i32) -> (i32, i32) {
    %c0_i32 = arith.constant 0 : i32
    %c0_i32_0 = arith.constant 0 : i32
    %c0_i32_1 = arith.constant 0 : i32
    return %c0_i32, %c0_i32_0 : i32, i32
  }
  func.func @transform_14(%arg0: i32) -> (i32, i32) {
    %c0_i32 = arith.constant 0 : i32
    %c0_i32_0 = arith.constant 0 : i32
    %c0_i32_1 = arith.constant 0 : i32
    return %c0_i32, %c0_i32_0 : i32, i32
  }
  func.func @transform_15(%arg0: i32) -> (i32, i32) {
    %c0_i32 = arith.constant 0 : i32
    %c0_i32_0 = arith.constant 0 : i32
    return %arg0, %c0_i32 : i32, i32
  }
}

</mosaic_0001>

<bundles_post_ra>
// kernel: mlp_batch_forward.1
= control target key start
LH: loop header
LB: loop body
LE: loop exit
PB: predicated region body
PF: predicated region fallthrough
CT: control target
= control target key end

     0   :  { %20 = vsyncpa [#allocation3], 0  ;;  %s5655_s0 = inlined_call_operand.vmem [shape: bf16[8,128], index: 0, kind: input, shape index: {}]   ;;  %s5656_s1 = inlined_call_operand.hbm [shape: bf16[128,1024], index: 1, kind: input, shape index: {}]   ;;  %s5657_s2 = inlined_call_operand.hbm [shape: f32[1,1024], index: 2, kind: input, shape index: {}]   ;;  %s5658_s3 = inlined_call_operand.hbm [shape: bf16[1024,512], index: 3, kind: input, shape index: {}]   ;;  %s5659_s4 = inlined_call_operand.vmem [shape: f32[1,512], index: 4, kind: input, shape index: {}]   ;;  %s5660_s5 = inlined_call_operand.hbm [shape: bf16[512,256], index: 5, kind: input, shape index: {}]   ;;  %s5661_s6 = inlined_call_operand.vmem [shape: f32[1,256], index: 6, kind: input, shape index: {}]   ;;  %s5662_s7 = inlined_call_operand.hbm [shape: bf16[256,256], index: 7, kind: input, shape index: {}]   ;;  %s5663_s8 = inlined_call_operand.hbm [shape: f32[1,256], index: 8, kind: input, shape index: {}]   ;;  %s5664_s9 = inlined_call_operand.hbm [shape: bf16[256,128], index: 9, kind: input, shape index: {}]   ;;  %s5665_s10 = inlined_call_operand.hbm [shape: f32[1,128], index: 10, kind: input, shape index: {}]   ;;  %s5666_s11 = inlined_call_operand.hbm [shape: bf16[128,128], index: 11, kind: input, shape index: {}]   ;;  %s5667_s12 = inlined_call_operand.hbm [shape: f32[1,128], index: 12, kind: input, shape index: {}]   ;;  %s5668_s13 = inlined_call_operand.vmem [shape: bf16[128,128], index: 13, kind: input, shape index: {}]   ;;  %s5669_s14 = inlined_call_operand.vmem [shape: f32[1,128], index: 14, kind: input, shape index: {}]   ;;  %s5670_s15 = inlined_call_operand.hbm [shape: f32[8,128], index: 15, kind: output, shape index: {}]  }
   0x1   :  { %21 = vsyncpa [#allocation6], 0 }
   0x2   :  { %22 = vsyncpa [#allocation9], 0 }
   0x3   :  { %23 = vsyncpa [#allocation12], 0 }
   0x4   :  { %24 = vsyncpa [#allocation15], 0 }
   0x5   :  { %25 = vsyncpa [#allocation18], 0 }
   0x6   :  { %26 = vsyncpa [#allocation4], 0  ;;  %s5273_s18 = smov [#allocation5]   ;;  %s5274_s20 = smov [#allocation8]  }
   0x7   :  { %s47_s19 = sshll.u32 %s5273_s18, 4  ;;  %s70_s21 = sshll.u32 %s5274_s20, 4  ;;  %s48_s19 = int_to_ptr.vmem [resolvable:$true] %s47_s19  ;;  %s5375_s21 = int_to_ptr.vmem [resolvable:$true] %s70_s21 }
   0x8   :  { %s5017_s24 = scalar_lea.hbm %s5657_s2, 128 }
   0x9   :  { %p5018_p0 = scmp.ne.s32.totalorder %s5657_s2, %s5017_s24  ;;  %p5021_p1 = scmp.lt.u32.totalorder %s5017_s24, %s5657_s2 }
   0xb   :  { %p5023_p2 = pnand %p5021_p1, %p5018_p0 }
   0xd   :  { %5026 = shalt.err (!%p5023_p2)
}
   0xe   :  { %s5027_s29 = scalar_lea.vmem %s48_s19, 128  ;;  %p5032_p4 = scmp.lt.s32.totalorder %s48_s19, %s48_s19 }
   0xf   :  { %p5028_p3 = scmp.ne.s32.totalorder %s48_s19, %s5027_s29  ;;  %p5033_p5 = scmp.lt.s32.totalorder %s5027_s29, %s5027_s29 }
  0x11   :  { %p5034_p6 = por %p5033_p5, %p5032_p4 }
  0x13   :  { %p5035_p7 = pnand %p5034_p6, %p5028_p3 }
  0x15   :  { %5038 = shalt.err (!%p5035_p7)
}
  0x16   :  { %50 = dma.hbm_to_vmem [thread:$0]  %s5657_s2, 128, %s48_s19, [#allocation6]  }
  0x17   :  { %s5039_s20 = scalar_lea.hbm %s5660_s5, 8192 }
  0x18   :  { %p5040_p8 = scmp.ne.s32.totalorder %s5660_s5, %s5039_s20  ;;  %p5043_p9 = scmp.lt.u32.totalorder %s5039_s20, %s5660_s5 }
  0x1a   :  { %p5045_p10 = pnand %p5043_p9, %p5040_p8 }
  0x1c   :  { %5048 = shalt.err (!%p5045_p10)
}
  0x1d   :  { %s5049_s26 = scalar_lea.vmem %s5375_s21, 8192  ;;  %p5054_p12 = scmp.lt.s32.totalorder %s5375_s21, %s5375_s21 }
  0x1e   :  { %p5050_p11 = scmp.ne.s32.totalorder %s5375_s21, %s5049_s26  ;;  %p5055_p13 = scmp.lt.s32.totalorder %s5049_s26, %s5049_s26 }
  0x20   :  { %p5056_p0 = por %p5055_p13, %p5054_p12 }
  0x22   :  { %p5057_p1 = pnand %p5056_p0, %p5050_p11 }
  0x24   :  { %5060 = shalt.err (!%p5057_p1)
}
  0x25   :  { %s5275_s2 = smov 128   ;;  %s5276_s19 = smov 8  }
  0x26   :  { %76 = dma.hbm_to_vmem [thread:$0]  %s5660_s5, 8192, %s5375_s21, [#allocation9], %s5275_s2, %s5275_s2, %s5276_s19  }
  0x27   :  { %s5277_s29 = smov [#allocation11]   ;;  %s5278_s16 = smov [#allocation14]  }
  0x28   :  { %s97_s30 = sshll.u32 %s5277_s29, 4  ;;  %s119_s17 = sshll.u32 %s5278_s16, 4  ;;  %s98_s30 = int_to_ptr.vmem [resolvable:$true] %s97_s30  ;;  %s120_s17 = int_to_ptr.vmem [resolvable:$true] %s119_s17 }
  0x29   :  { %s5061_s22 = scalar_lea.hbm %s5663_s8, 32 }
  0x2a   :  { %p5062_p2 = scmp.ne.s32.totalorder %s5663_s8, %s5061_s22  ;;  %p5065_p3 = scmp.lt.u32.totalorder %s5061_s22, %s5663_s8 }
  0x2c   :  { %p5067_p4 = pnand %p5065_p3, %p5062_p2 }
  0x2e   :  { %5070 = shalt.err (!%p5067_p4)
}
  0x2f   :  { %s5071_s5 = scalar_lea.vmem %s98_s30, 32  ;;  %p5076_p6 = scmp.lt.s32.totalorder %s98_s30, %s98_s30 }
  0x30   :  { %p5072_p5 = scmp.ne.s32.totalorder %s98_s30, %s5071_s5  ;;  %p5077_p7 = scmp.lt.s32.totalorder %s5071_s5, %s5071_s5 }
  0x32   :  { %p5078_p8 = por %p5077_p7, %p5076_p6 }
  0x34   :  { %p5079_p9 = pnand %p5078_p8, %p5072_p5 }
  0x36   :  { %5082 = shalt.err (!%p5079_p9)
}
  0x37   :  { %100 = dma.hbm_to_vmem [thread:$0]  %s5663_s8, 32, %s98_s30, [#allocation12]  }
  0x38   :  { %s5083_s16 = scalar_lea.hbm %s5665_s10, 16 }
  0x39   :  { %p5084_p10 = scmp.ne.s32.totalorder %s5665_s10, %s5083_s16  ;;  %p5087_p11 = scmp.lt.u32.totalorder %s5083_s16, %s5665_s10 }
  0x3b   :  { %p5089_p12 = pnand %p5087_p11, %p5084_p10 }
  0x3d   :  { %5092 = shalt.err (!%p5089_p12)
}
  0x3e   :  { %s5093_s24 = scalar_lea.vmem %s120_s17, 16  ;;  %s5097_s25 = scalar_lea.vmem %s120_s17, 32 }
  0x3f   :  { %p5094_p13 = scmp.ne.s32.totalorder %s120_s17, %s5093_s24  ;;  %p5098_p0 = scmp.lt.s32.totalorder %s120_s17, %s120_s17 }
  0x40   :  { %p5099_p1 = scmp.lt.s32.totalorder %s5097_s25, %s5093_s24 }
  0x42   :  { %p5100_p2 = por %p5099_p1, %p5098_p0 }
  0x44   :  { %p5101_p3 = pnand %p5100_p2, %p5094_p13 }
  0x46   :  { %5104 = shalt.err (!%p5101_p3)
}
  0x47   :  { %122 = dma.hbm_to_vmem [thread:$0]  %s5665_s10, 16, %s120_s17, [#allocation15]  }
  0x48   :  { %s5279_s26 = smov [#allocation2]   ;;  %s5105_s28 = scalar_lea.hbm %s5656_s1, 8192 }
  0x49   :  { %s34_s5 = sshll.u32 %s5279_s26, 4  ;;  %p5106_p4 = scmp.ne.s32.totalorder %s5656_s1, %s5105_s28  ;;  %s35_s5 = int_to_ptr.vmem [resolvable:$true] %s34_s5 }
  0x4a   :  { %p5109_p5 = scmp.lt.u32.totalorder %s5105_s28, %s5656_s1 }
  0x4c   :  { %p5111_p6 = pnand %p5109_p5, %p5106_p4 }
  0x4e   :  { %5114 = shalt.err (!%p5111_p6)
}
  0x4f   :  { %s5115_s22 = scalar_lea.vmem %s35_s5, 8192  ;;  %p5120_p8 = scmp.lt.s32.totalorder %s35_s5, %s35_s5 }
  0x50   :  { %p5116_p7 = scmp.ne.s32.totalorder %s35_s5, %s5115_s22  ;;  %p5121_p9 = scmp.lt.s32.totalorder %s5115_s22, %s5115_s22 }
  0x52   :  { %p5122_p10 = por %p5121_p9, %p5120_p8 }
  0x54   :  { %p5123_p11 = pnand %p5122_p10, %p5116_p7 }
  0x56   :  { %5126 = shalt.err (!%p5123_p11)
}
  0x57   :  { %s5280_s10 = smov 512   ;;  %s5281_s17 = smov 32  }
  0x58   :  { %40 = dma.hbm_to_vmem [thread:$0]  %s5656_s1, 8192, %s35_s5, [#allocation3], %s5280_s10, %s5280_s10, %s5281_s17  }
  0x59   :  { %s5282_s25 = smov [#allocation7]   ;;  %s5127_s21 = scalar_lea.hbm %s5658_s3, 32768 }
  0x5a   :  { %s56_s8 = sshll.u32 %s5282_s25, 4  ;;  %p5128_p12 = scmp.ne.s32.totalorder %s5658_s3, %s5127_s21  ;;  %s57_s8 = int_to_ptr.vmem [resolvable:$true] %s56_s8 }
  0x5b   :  { %p5131_p13 = scmp.lt.u32.totalorder %s5127_s21, %s5658_s3 }
  0x5d   :  { %p5133_p0 = pnand %p5131_p13, %p5128_p12 }
  0x5f   :  { %5136 = shalt.err (!%p5133_p0)
}
  0x60   :  { %s5137_s18 = scalar_lea.vmem %s57_s8, 32768  ;;  %p5142_p2 = scmp.lt.s32.totalorder %s57_s8, %s57_s8 }
  0x61   :  { %p5138_p1 = scmp.ne.s32.totalorder %s57_s8, %s5137_s18  ;;  %p5143_p3 = scmp.lt.s32.totalorder %s5137_s18, %s5137_s18 }
  0x63   :  { %p5144_p4 = por %p5143_p3, %p5142_p2 }
  0x65   :  { %p5145_p5 = pnand %p5144_p4, %p5138_p1 }
  0x67   :  { %5148 = shalt.err (!%p5145_p5)
}
  0x68   :  { %s5283_s1 = smov 256   ;;  %s5284_s5 = smov 16  }
  0x69   :  { %62 = dma.hbm_to_vmem [thread:$0]  %s5658_s3, 32768, %s57_s8, [#allocation6], %s5283_s1, %s5283_s1, %s5284_s5  }
  0x6a   :  { %s5285_s10 = smov [#allocation10]   ;;  %s5286_s23 = smov [#allocation13]  }
  0x6b   :  { %s84_s17 = sshll.u32 %s5285_s10, 4  ;;  %s106_s24 = sshll.u32 %s5286_s23, 4  ;;  %s85_s17 = int_to_ptr.vmem [resolvable:$true] %s84_s17  ;;  %s5457_s24 = int_to_ptr.vmem [resolvable:$true] %s106_s24 }
  0x6c   :  { %s5149_s26 = scalar_lea.hbm %s5662_s7, 4096 }
  0x6d   :  { %p5150_p6 = scmp.ne.s32.totalorder %s5662_s7, %s5149_s26  ;;  %p5153_p7 = scmp.lt.u32.totalorder %s5149_s26, %s5662_s7 }
  0x6f   :  { %p5155_p8 = pnand %p5153_p7, %p5150_p6 }
  0x71   :  { %5158 = shalt.err (!%p5155_p8)
}
  0x72   :  { %s5159_s3 = scalar_lea.vmem %s85_s17, 4096  ;;  %p5164_p10 = scmp.lt.s32.totalorder %s85_s17, %s85_s17 }
  0x73   :  { %p5160_p9 = scmp.ne.s32.totalorder %s85_s17, %s5159_s3  ;;  %p5165_p11 = scmp.lt.s32.totalorder %s5159_s3, %s5159_s3 }
  0x75   :  { %p5166_p12 = por %p5165_p11, %p5164_p10 }
  0x77   :  { %p5167_p13 = pnand %p5166_p12, %p5160_p9 }
  0x79   :  { %5170 = shalt.err (!%p5167_p13)
}
  0x7a   :  { %90 = dma.hbm_to_vmem [thread:$0]  %s5662_s7, 4096, %s85_s17, [#allocation9], %s5275_s2, %s5275_s2, %s5276_s19  }
  0x7b   :  { %s5171_s5 = scalar_lea.hbm %s5664_s9, 2048 }
  0x7c   :  { %p5172_p0 = scmp.ne.s32.totalorder %s5664_s9, %s5171_s5  ;;  %p5175_p1 = scmp.lt.u32.totalorder %s5171_s5, %s5664_s9 }
  0x7e   :  { %p5177_p2 = pnand %p5175_p1, %p5172_p0 }
  0x80   :  { %5180 = shalt.err (!%p5177_p2)
}
  0x81   :  { %s5181_s25 = scalar_lea.vmem %s5457_s24, 2048  ;;  %p5186_p4 = scmp.lt.s32.totalorder %s5457_s24, %s5457_s24 }
  0x82   :  { %p5182_p3 = scmp.ne.s32.totalorder %s5457_s24, %s5181_s25  ;;  %p5187_p5 = scmp.lt.s32.totalorder %s5181_s25, %s5181_s25 }
  0x84   :  { %p5188_p6 = por %p5187_p5, %p5186_p4 }
  0x86   :  { %p5189_p7 = pnand %p5188_p6, %p5182_p3 }
  0x88   :  { %5192 = shalt.err (!%p5189_p7)
}
  0x89   :  { %s5287_s7 = smov 64   ;;  %s5288_s2 = smov 4  }
  0x8a   :  { %112 = dma.hbm_to_vmem [thread:$0]  %s5664_s9, 2048, %s5457_s24, [#allocation12], %s5287_s7, %s5287_s7, %s5288_s2  }
  0x8b   :  { %s5289_s30 = smov [#allocation16]   ;;  %s5290_s21 = smov [#allocation17]  }
  0x8c   :  { %s128_s26 = sshll.u32 %s5289_s30, 4  ;;  %s141_s27 = sshll.u32 %s5290_s21, 4  ;;  %s129_s26 = int_to_ptr.vmem [resolvable:$true] %s128_s26  ;;  %s142_s27 = int_to_ptr.vmem [resolvable:$true] %s141_s27 }
  0x8d   :  { %s5193_s3 = scalar_lea.hbm %s5666_s11, 1024 }
  0x8e   :  { %p5194_p8 = scmp.ne.s32.totalorder %s5666_s11, %s5193_s3  ;;  %p5197_p9 = scmp.lt.u32.totalorder %s5193_s3, %s5666_s11 }
  0x90   :  { %p5199_p10 = pnand %p5197_p9, %p5194_p8 }
  0x92   :  { %5202 = shalt.err (!%p5199_p10)
}
  0x93   :  { %s5203_s9 = scalar_lea.vmem %s129_s26, 1024  ;;  %p5208_p12 = scmp.lt.s32.totalorder %s129_s26, %s129_s26 }
  0x94   :  { %p5204_p11 = scmp.ne.s32.totalorder %s129_s26, %s5203_s9  ;;  %p5209_p13 = scmp.lt.s32.totalorder %s5203_s9, %s5203_s9 }
  0x96   :  { %p5210_p0 = por %p5209_p13, %p5208_p12 }
  0x98   :  { %p5211_p1 = pnand %p5210_p0, %p5204_p11 }
  0x9a   :  { %5214 = shalt.err (!%p5211_p1)
}
  0x9b   :  { %134 = dma.hbm_to_vmem [thread:$0]  %s5666_s11, 1024, %s129_s26, [#allocation15], %s5287_s7, %s5287_s7, %s5288_s2  }
  0x9c   :  { %s5215_s10 = scalar_lea.hbm %s5667_s12, 16 }
  0x9d   :  { %p5216_p2 = scmp.ne.s32.totalorder %s5667_s12, %s5215_s10  ;;  %p5219_p3 = scmp.lt.u32.totalorder %s5215_s10, %s5667_s12 }
  0x9f   :  { %p5221_p4 = pnand %p5219_p3, %p5216_p2 }
  0xa1   :  { %5224 = shalt.err (!%p5221_p4)
}
  0xa2   :  { %s5225_s30 = scalar_lea.vmem %s142_s27, 16  ;;  %s5229_s21 = scalar_lea.vmem %s142_s27, 32 }
  0xa3   :  { %p5226_p5 = scmp.ne.s32.totalorder %s142_s27, %s5225_s30  ;;  %p5230_p6 = scmp.lt.s32.totalorder %s142_s27, %s142_s27 }
  0xa4   :  { %p5231_p7 = scmp.lt.s32.totalorder %s5229_s21, %s5225_s30 }
  0xa6   :  { %p5232_p8 = por %p5231_p7, %p5230_p6 }
  0xa8   :  { %p5233_p9 = pnand %p5232_p8, %p5226_p5 }
  0xaa   :  { %5236 = shalt.err (!%p5233_p9)
}
  0xab   :  { %144 = dma.hbm_to_vmem [thread:$0]  %s5667_s12, 16, %s142_s27, [#allocation18]  }
  0xac   :  { %5259 = dma.done.wait [#allocation3], 8192  }
  0xad   :  { %5260 = vsyncadd [#allocation3], 4294959104 }
  0xae   :  { %5261 = dma.done.wait [#allocation6], 32896  }
  0xaf   :  { %5262 = vsyncadd [#allocation6], 4294934400 }
  0xb0   :  { %5263 = dma.done.wait [#allocation9], 12288  }
  0xb1   :  { %5264 = vsyncadd [#allocation9], 4294955008 }
  0xb2   :  { %5265 = dma.done.wait [#allocation12], 2080  }
  0xb3   :  { %5266 = vsyncadd [#allocation12], 4294965216 }
  0xb4   :  { %5267 = dma.done.wait [#allocation15], 1040  }
  0xb5   :  { %5268 = vsyncadd [#allocation15], 4294966256 }
  0xb6   :  { %5269 = dma.done.wait [#allocation18], 16  }
  0xb7   :  { %5270 = vsyncadd [#allocation18], 4294967280  ;;  %v5291_v0 = vmov 0   ;;  %v181_v1 = vld [vmem:[#allocation2] sm:$0xff]  ;;  %v182_v14 = vld [vmem:[#allocation2 + $0x8] sm:$0xff]  ;;  %vm5293_vm0 = vmmov 0  }
  0xb8   :  { %639 = vmatprep.mubr.bf16.mxu0 %v5291_v0  ;;  %680 = vmatprep.mubr.bf16.mxu1 %v5291_v0  ;;  %v185_v2 = vld [vmem:[#allocation2 + $0x20] sm:$0xff]  ;;  %v186_v15 = vld [vmem:[#allocation2 + $0x28] sm:$0xff]  ;;  %v183_v58 = vld [vmem:[#allocation2 + $0x10] sm:$0xff]  ;;  %s5294_s30 = smov [#allocation19]  }
  0xb9   :  { %v189_v3 = vld [vmem:[#allocation2 + $0x40] sm:$0xff]  ;;  %v3835_v4 = vcombine.high %v181_v1, %v185_v2  ;;  %v3834_v5 = vcombine.low %v181_v1, %v185_v2  ;;  %v190_v16 = vld [vmem:[#allocation2 + $0x48] sm:$0xff]  ;;  %v3837_v18 = vcombine.high %v182_v14, %v186_v15  ;;  %v3836_v19 = vcombine.low %v182_v14, %v186_v15  ;;  %v187_v59 = vld [vmem:[#allocation2 + $0x30] sm:$0xff]  ;;  %s3820_s21 = sshll.u32 %s5294_s30, 4  ;;  %s3821_s21 = int_to_ptr.vmem [resolvable:$true] %s3820_s21 }
  0xba   :  { %v193_v6 = vld [vmem:[#allocation2 + $0x60] sm:$0xff]  ;;  %v194_v17 = vld [vmem:[#allocation2 + $0x68] sm:$0xff]  ;;  %v3839_v1 = vcombine.high %v183_v58, %v187_v59  ;;  %v5520_v2 = vld [vmem:[%s5655_s0] sm:$0xf]  ;;  %p5242_p11 = scmp.lt.s32.totalorder %s3821_s21, %s3821_s21 }
  0xbb   :  { %v3843_v7 = vcombine.high %v189_v3, %v193_v6  ;;  %v197_v8 = vld [vmem:[#allocation2 + $0x80] sm:$0xff]  ;;  %607 = vmatprep.subr.bf16.mxu0 %v3835_v4  ;;  %v3842_v10 = vcombine.low %v189_v3, %v193_v6  ;;  %v3845_v20 = vcombine.high %v190_v16, %v194_v17  ;;  %v198_v22 = vld [vmem:[#allocation2 + $0x88] sm:$0xff]  ;;  %648 = vmatprep.subr.bf16.mxu1 %v3837_v18  ;;  %v191_v4 = vld [vmem:[#allocation2 + $0x50] sm:$0xff] }
  0xbc   :  { %v201_v9 = vld [vmem:[#allocation2 + $0xa0] sm:$0xff]  ;;  %608 = vmatpush1.bf16.msra.mxu0 %v3834_v5  ;;  %v202_v23 = vld [vmem:[#allocation2 + $0xa8] sm:$0xff]  ;;  %649 = vmatpush1.bf16.msra.mxu1 %v3836_v19  ;;  %v3844_v27 = vcombine.low %v190_v16, %v194_v17  ;;  %v195_v5 = vld [vmem:[#allocation2 + $0x70] sm:$0xff] }
  0xbd   :  { %609 = vmatprep.subr.bf16.mxu0 %v3843_v7  ;;  %v3851_v11 = vcombine.high %v197_v8, %v201_v9  ;;  %v205_v12 = vld [vmem:[#allocation2 + $0xc0] sm:$0xff]  ;;  %v3850_v21 = vcombine.low %v197_v8, %v201_v9  ;;  %650 = vmatprep.subr.bf16.mxu1 %v3845_v20  ;;  %v3853_v28 = vcombine.high %v198_v22, %v202_v23  ;;  %v206_v30 = vld [vmem:[#allocation2 + $0xc8] sm:$0xff]  ;;  %v184_v7 = vld [vmem:[#allocation2 + $0x18] sm:$0xff] }
  0xbe   :  { %v209_v13 = vld [vmem:[#allocation2 + $0xe0] sm:$0xff]  ;;  %v210_v31 = vld [vmem:[#allocation2 + $0xe8] sm:$0xff]  ;;  %v3852_v35 = vcombine.low %v198_v22, %v202_v23  ;;  %v3838_v8 = vcombine.low %v183_v58, %v187_v59  ;;  %v188_v9 = vld [vmem:[#allocation2 + $0x38] sm:$0xff]  ;;  %v3846_v16 = vcombine.low %v191_v4, %v195_v5 }
  0xbf   :  { %v3859_v24 = vcombine.high %v205_v12, %v209_v13  ;;  %v213_v25 = vld [vmem:[#allocation2 + $0x100] sm:$0xff]  ;;  %v3858_v29 = vcombine.low %v205_v12, %v209_v13  ;;  %v3861_v36 = vcombine.high %v206_v30, %v210_v31  ;;  %v214_v38 = vld [vmem:[#allocation2 + $0x108] sm:$0xff]  ;;  %v3860_v43 = vcombine.low %v206_v30, %v210_v31  ;;  %v199_v12 = vld [vmem:[#allocation2 + $0x90] sm:$0xff] }
  0xc0   :  { %610 = vmatpush1.bf16.msra.mxu0 %v3842_v10  ;;  %v217_v26 = vld [vmem:[#allocation2 + $0x120] sm:$0xff]  ;;  %651 = vmatpush1.bf16.msra.mxu1 %v3844_v27  ;;  %v218_v39 = vld [vmem:[#allocation2 + $0x128] sm:$0xff]  ;;  %v3847_v10 = vcombine.high %v191_v4, %v195_v5  ;;  %v203_v13 = vld [vmem:[#allocation2 + $0xb0] sm:$0xff]  ;;  %v3841_v14 = vcombine.high %v184_v7, %v188_v9 }
  0xc1   :  { %611 = vmatprep.subr.bf16.mxu0 %v3851_v11  ;;  %v3867_v32 = vcombine.high %v213_v25, %v217_v26  ;;  %v221_v33 = vld [vmem:[#allocation2 + $0x140] sm:$0xff]  ;;  %652 = vmatprep.subr.bf16.mxu1 %v3853_v28  ;;  %v3866_v37 = vcombine.low %v213_v25, %v217_v26  ;;  %v3869_v44 = vcombine.high %v214_v38, %v218_v39  ;;  %v222_v46 = vld [vmem:[#allocation2 + $0x148] sm:$0xff]  ;;  %v192_v15 = vld [vmem:[#allocation2 + $0x58] sm:$0xff] }
  0xc2   :  { %v225_v34 = vld [vmem:[#allocation2 + $0x160] sm:$0xff]  ;;  %v226_v47 = vld [vmem:[#allocation2 + $0x168] sm:$0xff]  ;;  %v3868_v51 = vcombine.low %v214_v38, %v218_v39  ;;  %v196_v17 = vld [vmem:[#allocation2 + $0x78] sm:$0xff]  ;;  %v3855_v18 = vcombine.high %v199_v12, %v203_v13 }
  0xc3   :  { %v3875_v40 = vcombine.high %v221_v33, %v225_v34  ;;  %v229_v41 = vld [vmem:[#allocation2 + $0x180] sm:$0xff]  ;;  %v3874_v45 = vcombine.low %v221_v33, %v225_v34  ;;  %v3877_v52 = vcombine.high %v222_v46, %v226_v47  ;;  %v230_v53 = vld [vmem:[#allocation2 + $0x188] sm:$0xff]  ;;  %v3876_v57 = vcombine.low %v222_v46, %v226_v47  ;;  %v207_v19 = vld [vmem:[#allocation2 + $0xd0] sm:$0xff] }
  0xc4   :  { %612 = vmatpush1.bf16.msra.mxu0 %v3850_v21  ;;  %v233_v42 = vld [vmem:[#allocation2 + $0x1a0] sm:$0xff]  ;;  %653 = vmatpush1.bf16.msra.mxu1 %v3852_v35  ;;  %v234_v55 = vld [vmem:[#allocation2 + $0x1a8] sm:$0xff]  ;;  %v211_v20 = vld [vmem:[#allocation2 + $0xf0] sm:$0xff]  ;;  %v3840_v21 = vcombine.low %v184_v7, %v188_v9  ;;  %v3849_v22 = vcombine.high %v192_v15, %v196_v17 }
  0xc5   :  { %613 = vmatprep.subr.bf16.mxu0 %v3859_v24  ;;  %654 = vmatprep.subr.bf16.mxu1 %v3861_v36  ;;  %v3883_v48 = vcombine.high %v229_v41, %v233_v42  ;;  %v237_v49 = vld [vmem:[#allocation2 + $0x1c0] sm:$0xff]  ;;  %v3882_v54 = vcombine.low %v229_v41, %v233_v42  ;;  %v3885_v60 = vcombine.high %v230_v53, %v234_v55  ;;  %v238_v61 = vld [vmem:[#allocation2 + $0x1c8] sm:$0xff]  ;;  %v200_v23 = vld [vmem:[#allocation2 + $0x98] sm:$0xff] }
  0xc6   :  { %v241_v50 = vld [vmem:[#allocation2 + $0x1e0] sm:$0xff]  ;;  %v242_v63 = vld [vmem:[#allocation2 + $0x1e8] sm:$0xff]  ;;  %v3884_v3 = vcombine.low %v230_v53, %v234_v55  ;;  %v3854_v24 = vcombine.low %v199_v12, %v203_v13  ;;  %v204_v25 = vld [vmem:[#allocation2 + $0xb8] sm:$0xff]  ;;  %v3863_v26 = vcombine.high %v207_v19, %v211_v20 }
  0xc7   :  { %v3891_v56 = vcombine.high %v237_v49, %v241_v50  ;;  %v3890_v62 = vcombine.low %v237_v49, %v241_v50  ;;  %v3893_v6 = vcombine.high %v238_v61, %v242_v63  ;;  %v3892_v11 = vcombine.low %v238_v61, %v242_v63  ;;  %v215_v27 = vld [vmem:[#allocation2 + $0x110] sm:$0xff]  ;;  %v208_v31 = vld [vmem:[#allocation2 + $0xd8] sm:$0xff] }
  0xc8   :  { %614 = vmatpush1.bf16.msra.mxu0 %v3858_v29  ;;  %655 = vmatpush1.bf16.msra.mxu1 %v3860_v43  ;;  %v219_v28 = vld [vmem:[#allocation2 + $0x130] sm:$0xff]  ;;  %v3848_v29 = vcombine.low %v192_v15, %v196_v17  ;;  %v3857_v30 = vcombine.high %v200_v23, %v204_v25  ;;  %v212_v33 = vld [vmem:[#allocation2 + $0xf8] sm:$0xff] }
  0xc9   :  { %615 = vmatprep.subr.bf16.mxu0 %v3867_v32  ;;  %656 = vmatprep.subr.bf16.mxu1 %v3869_v44  ;;  %v3862_v32 = vcombine.low %v207_v19, %v211_v20  ;;  %v3871_v34 = vcombine.high %v215_v27, %v219_v28  ;;  %v223_v35 = vld [vmem:[#allocation2 + $0x150] sm:$0xff]  ;;  %v3865_v38 = vcombine.high %v208_v31, %v212_v33  ;;  %v216_v39 = vld [vmem:[#allocation2 + $0x118] sm:$0xff] }
  0xca   :  { %v227_v36 = vld [vmem:[#allocation2 + $0x170] sm:$0xff]  ;;  %v220_v41 = vld [vmem:[#allocation2 + $0x138] sm:$0xff]  ;;  %v3864_v44 = vcombine.low %v208_v31, %v212_v33 }
  0xcb   :  { %v231_v42 = vld [vmem:[#allocation2 + $0x190] sm:$0xff]  ;;  %v224_v46 = vld [vmem:[#allocation2 + $0x158] sm:$0xff]  ;;  %v3878_v47 = vcombine.low %v223_v35, %v227_v36 }
  0xcc   :  { %616 = vmatpush1.bf16.msra.mxu0 %v3866_v37  ;;  %657 = vmatpush1.bf16.msra.mxu1 %v3868_v51  ;;  %v3856_v37 = vcombine.low %v200_v23, %v204_v25  ;;  %v235_v43 = vld [vmem:[#allocation2 + $0x1b0] sm:$0xff]  ;;  %v232_v53 = vld [vmem:[#allocation2 + $0x198] sm:$0xff] }
  0xcd   :  { %617 = vmatprep.subr.bf16.mxu0 %v3875_v40  ;;  %658 = vmatprep.subr.bf16.mxu1 %v3877_v52  ;;  %v3870_v40 = vcombine.low %v215_v27, %v219_v28  ;;  %v3887_v49 = vcombine.high %v231_v42, %v235_v43  ;;  %v239_v50 = vld [vmem:[#allocation2 + $0x1d0] sm:$0xff]  ;;  %v3872_v52 = vcombine.low %v216_v39, %v220_v41  ;;  %v240_v59 = vld [vmem:[#allocation2 + $0x1d8] sm:$0xff] }
  0xce   :  { %v243_v51 = vld [vmem:[#allocation2 + $0x1f0] sm:$0xff]  ;;  %v4429_v5 = vld [vmem:[#allocation7 + $0x24] ss:$16 sps:$4 sm:$0xff]   ;;  %v4433_v12 = vld [vmem:[#allocation7 + $0x40] ss:$16 sps:$4 sm:$0xff]  }
  0xcf   :  { %v3894_v63 = vcombine.low %v239_v50, %v243_v51  ;;  %v4435_v9 = vld [vmem:[#allocation7 + $0x44] ss:$16 sps:$4 sm:$0xff]   ;;  %v4438_v15 = vld [vmem:[#allocation7 + $0x4c] ss:$16 sps:$4 sm:$0xff]   ;;  %v4445_v20 = vld [vmem:[#allocation7 + $0x80] ss:$16 sps:$4 sm:$0xff]  }
  0xd0   :  { %618 = vmatpush1.bf16.msra.mxu0 %v3874_v45  ;;  %659 = vmatpush1.bf16.msra.mxu1 %v3876_v57  ;;  %v3873_v45 = vcombine.high %v216_v39, %v220_v41  ;;  %v3895_v57 = vcombine.high %v239_v50, %v243_v51  ;;  %v4441_v13 = vld [vmem:[#allocation7 + $0x64] ss:$16 sps:$4 sm:$0xff]   ;;  %v4444_v19 = vld [vmem:[#allocation7 + $0x6c] ss:$16 sps:$4 sm:$0xff]   ;;  %v4448_v25 = vld [vmem:[#allocation7 + $0x88] ss:$16 sps:$4 sm:$0xff]  }
  0xd1   :  { %619 = vmatprep.subr.bf16.mxu0 %v3883_v48  ;;  %660 = vmatprep.subr.bf16.mxu1 %v3885_v60  ;;  %v228_v48 = vld [vmem:[#allocation2 + $0x178] sm:$0xff]  ;;  %v4450_v23 = vld [vmem:[#allocation7 + $0x8c] ss:$16 sps:$4 sm:$0xff]   ;;  %v4460_v33 = vld [vmem:[#allocation7 + $0xc8] ss:$16 sps:$4 sm:$0xff]  }
  0xd2   :  { %v3881_v55 = vcombine.high %v224_v46, %v228_v48  ;;  %v3880_v58 = vcombine.low %v224_v46, %v228_v48  ;;  %v244_v60 = vld [vmem:[#allocation2 + $0x1f8] sm:$0xff]  ;;  %v4472_v41 = vld [vmem:[#allocation7 + $0x108] ss:$16 sps:$4 sm:$0xff]   ;;  %v4492_v48 = vld [vmem:[#allocation7 + $0x16c] ss:$16 sps:$4 sm:$0xff]  }
  0xd3   :  { %v3897_v4 = vcombine.high %v240_v59, %v244_v60  ;;  %v3896_v7 = vcombine.low %v240_v59, %v244_v60  ;;  %v4447_v17 = vld [vmem:[#allocation7 + $0x84] ss:$16 sps:$4 sm:$0xff]   ;;  %v4457_v27 = vld [vmem:[#allocation7 + $0xc0] ss:$16 sps:$4 sm:$0xff]   ;;  %v4498_v51 = vld [vmem:[#allocation7 + $0x18c] ss:$16 sps:$4 sm:$0xff]  }
  0xd4   :  { %620 = vmatpush1.bf16.msra.mxu0 %v3882_v54  ;;  %661 = vmatpush1.bf16.msra.mxu1 %v3884_v3  ;;  %v236_v54 = vld [vmem:[#allocation2 + $0x1b8] sm:$0xff]  ;;  %v4510_v59 = vld [vmem:[#allocation7 + $0x1cc] ss:$16 sps:$4 sm:$0xff]  }
  0xd5   :  { %621 = vmatprep.subr.bf16.mxu0 %v3891_v56  ;;  %662 = vmatprep.subr.bf16.mxu1 %v3893_v6  ;;  %v3886_v56 = vcombine.low %v231_v42, %v235_v43  ;;  %v3889_v61 = vcombine.high %v232_v53, %v236_v54  ;;  %v4421_v3 = vld [vmem:[#allocation7] ss:$16 sps:$4 sm:$0xff]   ;;  %v4426_v6 = vld [vmem:[#allocation7 + $0xc] ss:$16 sps:$4 sm:$0xff]   ;;  %v4465_v28 = vld [vmem:[#allocation7 + $0xe4] ss:$16 sps:$4 sm:$0xff]  }
  0xd6   :  { %v4463_v31 = vld [vmem:[#allocation7 + $0xe0] ss:$16 sps:$4 sm:$0xff]   ;;  %v4489_v43 = vld [vmem:[#allocation7 + $0x164] ss:$16 sps:$4 sm:$0xff]  }
  0xd7   :  { %v4475_v39 = vld [vmem:[#allocation7 + $0x120] ss:$16 sps:$4 sm:$0xff]   ;;  %v4495_v50 = vld [vmem:[#allocation7 + $0x184] ss:$16 sps:$4 sm:$0xff]  }
  0xd8   :  { %622 = vmatpush1.bf16.msra.mxu0 %v3890_v62  ;;  %663 = vmatpush1.bf16.msra.mxu1 %v3892_v11  ;;  %v4423_v62 = vld [vmem:[#allocation7 + $0x4] ss:$16 sps:$4 sm:$0xff]   ;;  %v4432_v11 = vld [vmem:[#allocation7 + $0x2c] ss:$16 sps:$4 sm:$0xff]   ;;  %v4481_v42 = vld [vmem:[#allocation7 + $0x140] ss:$16 sps:$4 sm:$0xff]  }
  0xd9   :  { %689 = vmatprep.subr.bf16.mxu0 %v3839_v1  ;;  %730 = vmatprep.subr.bf16.mxu1 %v3841_v14  ;;  %v3888_v1 = vcombine.low %v232_v53, %v236_v54  ;;  %v4430_v14 = vld [vmem:[#allocation7 + $0x28] ss:$16 sps:$4 sm:$0xff]   ;;  %v4487_v46 = vld [vmem:[#allocation7 + $0x160] ss:$16 sps:$4 sm:$0xff]   ;;  %v4501_v54 = vld [vmem:[#allocation7 + $0x1a4] ss:$16 sps:$4 sm:$0xff]  }
  0xda   :  { %v4496_v53 = vld [vmem:[#allocation7 + $0x188] ss:$16 sps:$4 sm:$0xff]   ;;  %v4505_v60 = vld [vmem:[#allocation7 + $0x1c0] ss:$16 sps:$4 sm:$0xff]  }
  0xdb   :  { %640 = vmatmul.mubr.bf16.vlgmr.msra.gmra.mrb[0].mxu0 %v5520_v2  ;;  %681 = vmatmul.mubr.bf16.vlgmr.msra.gmra.mrb[0].mxu1 %v5520_v2 }
  0xdc   :  { %690 = vmatpush1.bf16.msra.mxu0 %v3838_v8  ;;  %721 = vmatprep.mubr.bf16.mxu0 %v5291_v0  ;;  %v4427_v8 = vld [vmem:[#allocation7 + $0x20] ss:$16 sps:$4 sm:$0xff]  }
  0xdd   :  { %691 = vmatprep.subr.bf16.mxu0 %v3847_v10  ;;  %731 = vmatpush1.bf16.msra.mxu1 %v3840_v21  ;;  %v4424_v10 = vld [vmem:[#allocation7 + $0x8] ss:$16 sps:$4 sm:$0xff]   ;;  %v4453_v21 = vld [vmem:[#allocation7 + $0xa4] ss:$16 sps:$4 sm:$0xff]  }
  0xde   :  { %762 = vmatprep.mubr.bf16.mxu1 %v5291_v0  ;;  %732 = vmatprep.subr.bf16.mxu1 %v3849_v22  ;;  %v3879_v0 = vcombine.high %v223_v35, %v227_v36  ;;  %v4442_v22 = vld [vmem:[#allocation7 + $0x68] ss:$16 sps:$4 sm:$0xff]   ;;  %v4469_v35 = vld [vmem:[#allocation7 + $0x100] ss:$16 sps:$4 sm:$0xff]   ;;  %v4477_v36 = vld [vmem:[#allocation7 + $0x124] ss:$16 sps:$4 sm:$0xff]  }
  0xe0   :  { %692 = vmatpush1.bf16.msra.mxu0 %v3846_v16  ;;  %v4439_v16 = vld [vmem:[#allocation7 + $0x60] ss:$16 sps:$4 sm:$0xff]  }
  0xe1   :  { %693 = vmatprep.subr.bf16.mxu0 %v3855_v18  ;;  %733 = vmatpush1.bf16.msra.mxu1 %v3848_v29  ;;  %v4436_v18 = vld [vmem:[#allocation7 + $0x48] ss:$16 sps:$4 sm:$0xff]  }
  0xe2   :  { %734 = vmatprep.subr.bf16.mxu1 %v3857_v30  ;;  %v4454_v29 = vld [vmem:[#allocation7 + $0xa8] ss:$16 sps:$4 sm:$0xff]   ;;  %v4462_v30 = vld [vmem:[#allocation7 + $0xcc] ss:$16 sps:$4 sm:$0xff]  }
  0xe4   :  { %694 = vmatpush1.bf16.msra.mxu0 %v3854_v24  ;;  %v4459_v24 = vld [vmem:[#allocation7 + $0xc4] ss:$16 sps:$4 sm:$0xff]  }
  0xe5   :  { %695 = vmatprep.subr.bf16.mxu0 %v3863_v26  ;;  %735 = vmatpush1.bf16.msra.mxu1 %v3856_v37  ;;  %v4456_v26 = vld [vmem:[#allocation7 + $0xac] ss:$16 sps:$4 sm:$0xff]   ;;  %v4466_v37 = vld [vmem:[#allocation7 + $0xe8] ss:$16 sps:$4 sm:$0xff]  }
  0xe6   :  { %736 = vmatprep.subr.bf16.mxu1 %v3865_v38  ;;  %v4474_v38 = vld [vmem:[#allocation7 + $0x10c] ss:$16 sps:$4 sm:$0xff]  }
  0xe8   :  { %696 = vmatpush1.bf16.msra.mxu0 %v3862_v32  ;;  %v4471_v32 = vld [vmem:[#allocation7 + $0x104] ss:$16 sps:$4 sm:$0xff]  }
  0xe9   :  { %697 = vmatprep.subr.bf16.mxu0 %v3871_v34  ;;  %737 = vmatpush1.bf16.msra.mxu1 %v3864_v44  ;;  %v4468_v34 = vld [vmem:[#allocation7 + $0xec] ss:$16 sps:$4 sm:$0xff]   ;;  %v4478_v44 = vld [vmem:[#allocation7 + $0x128] ss:$16 sps:$4 sm:$0xff]  }
  0xea   :  { %738 = vmatprep.subr.bf16.mxu1 %v3873_v45  ;;  %v4486_v45 = vld [vmem:[#allocation7 + $0x14c] ss:$16 sps:$4 sm:$0xff]  }
  0xec   :  { %698 = vmatpush1.bf16.msra.mxu0 %v3870_v40  ;;  %v4483_v40 = vld [vmem:[#allocation7 + $0x144] ss:$16 sps:$4 sm:$0xff]  }
  0xed   :  { %699 = vmatprep.subr.bf16.mxu0 %v3879_v0  ;;  %739 = vmatpush1.bf16.msra.mxu1 %v3872_v52  ;;  %v4480_v0 = vld [vmem:[#allocation7 + $0x12c] ss:$16 sps:$4 sm:$0xff]   ;;  %v4493_v52 = vld [vmem:[#allocation7 + $0x180] ss:$16 sps:$4 sm:$0xff]  }
  0xee   :  { %740 = vmatprep.subr.bf16.mxu1 %v3881_v55  ;;  %v4504_v55 = vld [vmem:[#allocation7 + $0x1ac] ss:$16 sps:$4 sm:$0xff]  }
  0xf0   :  { %700 = vmatpush1.bf16.msra.mxu0 %v3878_v47  ;;  %v4484_v47 = vld [vmem:[#allocation7 + $0x148] ss:$16 sps:$4 sm:$0xff]  }
  0xf1   :  { %701 = vmatprep.subr.bf16.mxu0 %v3887_v49  ;;  %741 = vmatpush1.bf16.msra.mxu1 %v3880_v58  ;;  %v4490_v49 = vld [vmem:[#allocation7 + $0x168] ss:$16 sps:$4 sm:$0xff]   ;;  %v4507_v58 = vld [vmem:[#allocation7 + $0x1c4] ss:$16 sps:$4 sm:$0xff]  }
  0xf2   :  { %742 = vmatprep.subr.bf16.mxu1 %v3889_v61  ;;  %v4508_v61 = vld [vmem:[#allocation7 + $0x1c8] ss:$16 sps:$4 sm:$0xff]  }
  0xf4   :  { %702 = vmatpush1.bf16.msra.mxu0 %v3886_v56  ;;  %v4499_v56 = vld [vmem:[#allocation7 + $0x1a0] ss:$16 sps:$4 sm:$0xff]  }
  0xf5   :  { %703 = vmatprep.subr.bf16.mxu0 %v3895_v57  ;;  %743 = vmatpush1.bf16.msra.mxu1 %v3888_v1  ;;  %v4502_v57 = vld [vmem:[#allocation7 + $0x1a8] ss:$16 sps:$4 sm:$0xff]   ;;  %v4511_v1 = vld [vmem:[#allocation7 + $0x1e0] ss:$16 sps:$4 sm:$0xff]  }
  0xf6   :  { %744 = vmatprep.subr.bf16.mxu1 %v3897_v4  ;;  %v4519_v4 = vld [vmem:[#allocation7 + $0x204] ss:$16 sps:$4 sm:$0xff]  }
  0xf8   :  { %704 = vmatpush1.bf16.msra.mxu0 %v3894_v63  ;;  %v4516_v63 = vld [vmem:[#allocation7 + $0x1ec] ss:$16 sps:$4 sm:$0xff]  }
  0xf9   :  { %2345 = vmatprep.subr.bf16.mxu0 %v4423_v62  ;;  %745 = vmatpush1.bf16.msra.mxu1 %v3896_v7  ;;  %v4513_v62 = vld [vmem:[#allocation7 + $0x1e4] ss:$16 sps:$4 sm:$0xff]  }
  0xfa   :  { %2509 = vmatprep.subr.bf16.mxu1 %v4426_v6  ;;  %v247_v6 = vlaneseq }
  0xfb   :  { %722 = vmatmul.mubr.bf16.vlgmr.msra.gmra.mrb[4].mxu0 %v5520_v2 }
  0xfc   :  { %2346 = vmatpush1.bf16.msra.mxu0 %v4421_v3  ;;  %763 = vmatmul.mubr.bf16.vlgmr.msra.gmra.mrb[4].mxu1 %v5520_v2  ;;  %v4451_v2 = vld [vmem:[#allocation7 + $0xa0] ss:$16 sps:$4 sm:$0xff]   ;;  %v4514_v3 = vld [vmem:[#allocation7 + $0x1e8] ss:$16 sps:$4 sm:$0xff]   ;;  %v5528_v7 = vshrl.u32 %v247_v6, 7 }
  0xfd   :  { %2347 = vmatprep.subr.bf16.mxu0 %v4429_v5  ;;  %2510 = vmatpush1.bf16.msra.mxu1 %v4424_v10  ;;  %v4522_v5 = vld [vmem:[#allocation7 + $0x20c] ss:$16 sps:$4 sm:$0xff]   ;;  %v4573_v6 = vld [vmem:[#allocation7 + $0x324] ss:$16 sps:$4 sm:$0xff]  }
  0xfe   :  { %2511 = vmatprep.subr.bf16.mxu1 %v4432_v11  ;;  %v5536_v10 = vsub.s32 1, %v5528_v7 }
 0x100   :  { %2348 = vmatpush1.bf16.msra.mxu0 %v4427_v8  ;;  %v5531_v8 = vsub.s32 0, %v5528_v7 }
 0x101   :  { %2349 = vmatprep.subr.bf16.mxu0 %v4435_v9  ;;  %2512 = vmatpush1.bf16.msra.mxu1 %v4430_v14  ;;  %v5533_v9 = vld [vmem:[#allocation5] sm:$0xff]  ;;  %v261_v14 = vsub.s32 3, %v5528_v7 }
 0x102   :  { %2513 = vmatprep.subr.bf16.mxu1 %v4438_v15  ;;  %v250_v11 = vrot.slane %v5533_v9, %v5531_v8 }
 0x104   :  { %2350 = vmatpush1.bf16.msra.mxu0 %v4433_v12  ;;  %v254_v12 = vrot.slane %v5533_v9, %v5536_v10 }
 0x105   :  { %2351 = vmatprep.subr.bf16.mxu0 %v4441_v13  ;;  %2514 = vmatpush1.bf16.msra.mxu1 %v4436_v18 }
 0x106   :  { %2515 = vmatprep.subr.bf16.mxu1 %v4444_v19 }
 0x108   :  { %2352 = vmatpush1.bf16.msra.mxu0 %v4439_v16 }
 0x109   :  { %2353 = vmatprep.subr.bf16.mxu0 %v4447_v17  ;;  %2516 = vmatpush1.bf16.msra.mxu1 %v4442_v22 }
 0x10a   :  { %2517 = vmatprep.subr.bf16.mxu1 %v4450_v23 }
 0x10c   :  { %2354 = vmatpush1.bf16.msra.mxu0 %v4445_v20  ;;  %v262_v20 = vrot.slane %v5533_v9, %v261_v14 }
 0x10d   :  { %2355 = vmatprep.subr.bf16.mxu0 %v4453_v21  ;;  %2518 = vmatpush1.bf16.msra.mxu1 %v4448_v25 }
 0x10e   :  { %2519 = vmatprep.subr.bf16.mxu1 %v4456_v26 }
 0x110   :  { %2356 = vmatpush1.bf16.msra.mxu0 %v4451_v2 }
 0x111   :  { %2357 = vmatprep.subr.bf16.mxu0 %v4459_v24  ;;  %2520 = vmatpush1.bf16.msra.mxu1 %v4454_v29  ;;  %v4520_v29 = vld [vmem:[#allocation7 + $0x208] ss:$16 sps:$4 sm:$0xff]  }
 0x112   :  { %2521 = vmatprep.subr.bf16.mxu1 %v4462_v30 }
 0x114   :  { %2358 = vmatpush1.bf16.msra.mxu0 %v4457_v27 }
 0x115   :  { %2359 = vmatprep.subr.bf16.mxu0 %v4465_v28  ;;  %2522 = vmatpush1.bf16.msra.mxu1 %v4460_v33  ;;  %v4517_v28 = vld [vmem:[#allocation7 + $0x200] ss:$16 sps:$4 sm:$0xff]  }
 0x116   :  { %2523 = vmatprep.subr.bf16.mxu1 %v4468_v34  ;;  %v4523_v33 = vld [vmem:[#allocation7 + $0x220] ss:$16 sps:$4 sm:$0xff]   ;;  %v4526_v34 = vld [vmem:[#allocation7 + $0x228] ss:$16 sps:$4 sm:$0xff]  }
 0x118   :  { %2360 = vmatpush1.bf16.msra.mxu0 %v4463_v31  ;;  %v4525_v31 = vld [vmem:[#allocation7 + $0x224] ss:$16 sps:$4 sm:$0xff]  }
 0x119   :  { %2361 = vmatprep.subr.bf16.mxu0 %v4471_v32  ;;  %2524 = vmatpush1.bf16.msra.mxu1 %v4466_v37  ;;  %v4528_v32 = vld [vmem:[#allocation7 + $0x22c] ss:$16 sps:$4 sm:$0xff]  }
 0x11a   :  { %2525 = vmatprep.subr.bf16.mxu1 %v4474_v38  ;;  %v4534_v37 = vld [vmem:[#allocation7 + $0x24c] ss:$16 sps:$4 sm:$0xff]  }
 0x11c   :  { %2362 = vmatpush1.bf16.msra.mxu0 %v4469_v35 }
 0x11d   :  { %2363 = vmatprep.subr.bf16.mxu0 %v4477_v36  ;;  %2526 = vmatpush1.bf16.msra.mxu1 %v4472_v41  ;;  %v4531_v36 = vld [vmem:[#allocation7 + $0x244] ss:$16 sps:$4 sm:$0xff]  }
 0x11e   :  { %2527 = vmatprep.subr.bf16.mxu1 %v4480_v0  ;;  %v4537_v41 = vld [vmem:[#allocation7 + $0x264] ss:$16 sps:$4 sm:$0xff]   ;;  %v4540_v0 = vld [vmem:[#allocation7 + $0x26c] ss:$16 sps:$4 sm:$0xff]  }
 0x120   :  { %2364 = vmatpush1.bf16.msra.mxu0 %v4475_v39  ;;  %v4529_v39 = vld [vmem:[#allocation7 + $0x240] ss:$16 sps:$4 sm:$0xff]  }
 0x121   :  { %2365 = vmatprep.subr.bf16.mxu0 %v4483_v40  ;;  %2528 = vmatpush1.bf16.msra.mxu1 %v4478_v44  ;;  %v4532_v40 = vld [vmem:[#allocation7 + $0x248] ss:$16 sps:$4 sm:$0xff]   ;;  %v4543_v44 = vld [vmem:[#allocation7 + $0x284] ss:$16 sps:$4 sm:$0xff]  }
 0x122   :  { %2529 = vmatprep.subr.bf16.mxu1 %v4486_v45  ;;  %v4546_v45 = vld [vmem:[#allocation7 + $0x28c] ss:$16 sps:$4 sm:$0xff]  }
 0x124   :  { %2366 = vmatpush1.bf16.msra.mxu0 %v4481_v42  ;;  %v4535_v42 = vld [vmem:[#allocation7 + $0x260] ss:$16 sps:$4 sm:$0xff]  }
 0x125   :  { %2367 = vmatprep.subr.bf16.mxu0 %v4489_v43  ;;  %2530 = vmatpush1.bf16.msra.mxu1 %v4484_v47  ;;  %v4538_v43 = vld [vmem:[#allocation7 + $0x268] ss:$16 sps:$4 sm:$0xff]  }
 0x126   :  { %2531 = vmatprep.subr.bf16.mxu1 %v4492_v48  ;;  %v4544_v47 = vld [vmem:[#allocation7 + $0x288] ss:$16 sps:$4 sm:$0xff]   ;;  %v4549_v48 = vld [vmem:[#allocation7 + $0x2a4] ss:$16 sps:$4 sm:$0xff]  }
 0x128   :  { %2368 = vmatpush1.bf16.msra.mxu0 %v4487_v46  ;;  %v4541_v46 = vld [vmem:[#allocation7 + $0x280] ss:$16 sps:$4 sm:$0xff]  }
 0x129   :  { %2532 = vmatpush1.bf16.msra.mxu1 %v4490_v49  ;;  %2369 = vmatprep.subr.bf16.mxu0 %v4495_v50  ;;  %v4552_v49 = vld [vmem:[#allocation7 + $0x2ac] ss:$16 sps:$4 sm:$0xff]  }
 0x12a   :  { %2533 = vmatprep.subr.bf16.mxu1 %v4498_v51 }
 0x12c   :  { %2370 = vmatpush1.bf16.msra.mxu0 %v4493_v52 }
 0x12d   :  { %2534 = vmatpush1.bf16.msra.mxu1 %v4496_v53  ;;  %2371 = vmatprep.subr.bf16.mxu0 %v4501_v54  ;;  %v4547_v53 = vld [vmem:[#allocation7 + $0x2a0] ss:$16 sps:$4 sm:$0xff]   ;;  %v4550_v54 = vld [vmem:[#allocation7 + $0x2a8] ss:$16 sps:$4 sm:$0xff]  }
 0x12e   :  { %2535 = vmatprep.subr.bf16.mxu1 %v4504_v55 }
 0x130   :  { %2372 = vmatpush1.bf16.msra.mxu0 %v4499_v56  ;;  %v4555_v56 = vld [vmem:[#allocation7 + $0x2c4] ss:$16 sps:$4 sm:$0xff]  }
 0x131   :  { %2536 = vmatpush1.bf16.msra.mxu1 %v4502_v57  ;;  %2373 = vmatprep.subr.bf16.mxu0 %v4507_v58  ;;  %v4558_v57 = vld [vmem:[#allocation7 + $0x2cc] ss:$16 sps:$4 sm:$0xff]   ;;  %v4553_v58 = vld [vmem:[#allocation7 + $0x2c0] ss:$16 sps:$4 sm:$0xff]  }
 0x132   :  { %2537 = vmatprep.subr.bf16.mxu1 %v4510_v59  ;;  %v4556_v59 = vld [vmem:[#allocation7 + $0x2c8] ss:$16 sps:$4 sm:$0xff]  }
 0x134   :  { %2374 = vmatpush1.bf16.msra.mxu0 %v4505_v60  ;;  %v4561_v60 = vld [vmem:[#allocation7 + $0x2e4] ss:$16 sps:$4 sm:$0xff]  }
 0x135   :  { %2538 = vmatpush1.bf16.msra.mxu1 %v4508_v61  ;;  %2375 = vmatprep.subr.bf16.mxu0 %v4513_v62  ;;  %v4564_v61 = vld [vmem:[#allocation7 + $0x2ec] ss:$16 sps:$4 sm:$0xff]   ;;  %v4559_v62 = vld [vmem:[#allocation7 + $0x2e0] ss:$16 sps:$4 sm:$0xff]  }
 0x136   :  { %2539 = vmatprep.subr.bf16.mxu1 %v4516_v63  ;;  %v4562_v63 = vld [vmem:[#allocation7 + $0x2e8] ss:$16 sps:$4 sm:$0xff]  }
 0x138   :  { %2376 = vmatpush1.bf16.msra.mxu0 %v4511_v1  ;;  %v4567_v1 = vld [vmem:[#allocation7 + $0x304] ss:$16 sps:$4 sm:$0xff]  }
 0x139   :  { %2540 = vmatpush1.bf16.msra.mxu1 %v4514_v3  ;;  %2386 = vmatprep.subr.bf16.mxu0 %v4519_v4  ;;  %v4570_v3 = vld [vmem:[#allocation7 + $0x30c] ss:$16 sps:$4 sm:$0xff]   ;;  %v4565_v4 = vld [vmem:[#allocation7 + $0x300] ss:$16 sps:$4 sm:$0xff]  }
 0x13a   :  { %2550 = vmatprep.subr.bf16.mxu1 %v4522_v5  ;;  %v4568_v5 = vld [vmem:[#allocation7 + $0x308] ss:$16 sps:$4 sm:$0xff]  }
 0x1ae   :  { %v641_v13 = vpop.f32.mrb[0].mxu0  ;;  %v5546_v21 = vpop.f32.mrb[0].mxu1 }
 0x1af   :  { %v642_v15 = vadd.f32 %v641_v13, %v250_v11  ;;  %v643_v16 = vpop.f32.mrb[1].mxu0  ;;  %v684_v22 = vpop.f32.mrb[1].mxu1  ;;  %v4576_v11 = vld [vmem:[#allocation7 + $0x32c] ss:$16 sps:$4 sm:$0xff]   ;;  %v4574_v13 = vld [vmem:[#allocation7 + $0x328] ss:$16 sps:$4 sm:$0xff]  }
 0x1b0   :  { %v644_v17 = vadd.f32 %v643_v16, %v254_v12  ;;  %v645_v18 = vpop.f32.mrb[2].mxu0  ;;  %v685_v23 = vadd.f32 %v684_v22, %v262_v20  ;;  %v686_v2 = vpop.f32.mrb[2].mxu1  ;;  %v4571_v12 = vld [vmem:[#allocation7 + $0x320] ss:$16 sps:$4 sm:$0xff]   ;;  %v4582_v16 = vld [vmem:[#allocation7 + $0x34c] ss:$16 sps:$4 sm:$0xff]  }
 0x1b1   :  { %4981 = vtanh.f32 %v642_v15  ;;  %v646_v19 = vpop.f32.mrb[3].mxu0  ;;  %v687_v24 = vpop.f32.mrb[3].mxu1  ;;  %v4579_v15 = vld [vmem:[#allocation7 + $0x344] ss:$16 sps:$4 sm:$0xff]   ;;  %v4577_v18 = vld [vmem:[#allocation7 + $0x340] ss:$16 sps:$4 sm:$0xff]  }
 0x1b2   :  { %4983 = vtanh.f32 %v644_v17  ;;  %v257_v17 = vsub.s32 2, %v5528_v7  ;;  %v4580_v19 = vld [vmem:[#allocation7 + $0x348] ss:$16 sps:$4 sm:$0xff]   ;;  %v4585_v20 = vld [vmem:[#allocation7 + $0x364] ss:$16 sps:$4 sm:$0xff]  }
 0x1b3   :  { %4985 = vtanh.f32 %v685_v23  ;;  %v4588_v22 = vld [vmem:[#allocation7 + $0x36c] ss:$16 sps:$4 sm:$0xff]   ;;  %v269_v23 = vsub.s32 5, %v5528_v7  ;;  %v4583_v24 = vld [vmem:[#allocation7 + $0x360] ss:$16 sps:$4 sm:$0xff]  }
 0x1b4   :  { %v258_v2 = vrot.slane %v5533_v9, %v257_v17 }
 0x1bb   :  { %v4982_v25 = vpop.eup %4981 }
 0x1bc   :  { %v4984_v26 = vpop.eup %4983  ;;  %v779_v30 = vpack.c.bf16 %v4982_v25, %v4982_v25  ;;  %v4586_v25 = vld [vmem:[#allocation7 + $0x368] ss:$16 sps:$4 sm:$0xff]  }
 0x1bd   :  { %v780_v27 = vpack.c.bf16 %v4984_v26, %v4984_v26  ;;  %v4986_v35 = vpop.eup %4985 }
 0x1be   :  { %v782_v38 = vpack.c.bf16 %v4986_v35, %v4986_v35  ;;  %v4592_v35 = vld [vmem:[#allocation7 + $0x388] ss:$16 sps:$4 sm:$0xff]  }
 0x1bf   :  { %2377 = vmatprep.mubr.bf16.mxu0 %v780_v27  ;;  %2541 = vmatprep.mubr.bf16.mxu1 %v780_v27  ;;  %v4591_v27 = vld [vmem:[#allocation7 + $0x384] ss:$16 sps:$4 sm:$0xff]  }
 0x1c0   :  { %2378 = vmatmul.mubr.bf16.vlgmr.msra.gmra.mrb[8].mxu0 %v779_v30  ;;  %2542 = vmatmul.mubr.bf16.vlgmr.msra.gmra.mrb[8].mxu1 %v779_v30 }
 0x1c1   :  { %2387 = vmatpush1.bf16.msra.mxu0 %v4517_v28  ;;  %2551 = vmatpush1.bf16.msra.mxu1 %v4520_v29  ;;  %v4594_v28 = vld [vmem:[#allocation7 + $0x38c] ss:$16 sps:$4 sm:$0xff]   ;;  %v270_v29 = vrot.slane %v5533_v9, %v269_v23  ;;  %v4649_v23 = vld [vmem:[#allocation7 + $0x4c0] ss:$16 sps:$4 sm:$0xff]  }
 0x1c2   :  { %2388 = vmatprep.subr.bf16.mxu0 %v4525_v31  ;;  %2552 = vmatprep.subr.bf16.mxu1 %v4528_v32  ;;  %v683_v31 = vadd.f32 %v5546_v21, %v258_v2  ;;  %v4603_v21 = vld [vmem:[#allocation7 + $0x3c4] ss:$16 sps:$4 sm:$0xff]   ;;  %v4652_v2 = vld [vmem:[#allocation7 + $0x4c8] ss:$16 sps:$4 sm:$0xff]  }
 0x1c3   :  { %2418 = vmatprep.mubr.bf16.mxu0 %v782_v38  ;;  %2582 = vmatprep.mubr.bf16.mxu1 %v782_v38 }
 0x1c4   :  { %4987 = vtanh.f32 %v683_v31  ;;  %v4666_v31 = vld [vmem:[#allocation7 + $0x50c] ss:$16 sps:$4 sm:$0xff]  }
 0x1c5   :  { %2389 = vmatpush1.bf16.msra.mxu0 %v4523_v33  ;;  %2553 = vmatpush1.bf16.msra.mxu1 %v4526_v34  ;;  %v4589_v34 = vld [vmem:[#allocation7 + $0x380] ss:$16 sps:$4 sm:$0xff]  }
 0x1c6   :  { %2390 = vmatprep.subr.bf16.mxu0 %v4531_v36  ;;  %2554 = vmatprep.subr.bf16.mxu1 %v4534_v37  ;;  %v4597_v36 = vld [vmem:[#allocation7 + $0x3a4] ss:$16 sps:$4 sm:$0xff]   ;;  %v4600_v37 = vld [vmem:[#allocation7 + $0x3ac] ss:$16 sps:$4 sm:$0xff]  }
 0x1c9   :  { %2391 = vmatpush1.bf16.msra.mxu0 %v4529_v39  ;;  %2555 = vmatpush1.bf16.msra.mxu1 %v4532_v40  ;;  %v4595_v39 = vld [vmem:[#allocation7 + $0x3a0] ss:$16 sps:$4 sm:$0xff]   ;;  %v4598_v40 = vld [vmem:[#allocation7 + $0x3a8] ss:$16 sps:$4 sm:$0xff]  }
 0x1ca   :  { %2392 = vmatprep.subr.bf16.mxu0 %v4537_v41  ;;  %2556 = vmatprep.subr.bf16.mxu1 %v4540_v0  ;;  %v4606_v41 = vld [vmem:[#allocation7 + $0x3cc] ss:$16 sps:$4 sm:$0xff]   ;;  %v4601_v0 = vld [vmem:[#allocation7 + $0x3c0] ss:$16 sps:$4 sm:$0xff]  }
 0x1cd   :  { %2393 = vmatpush1.bf16.msra.mxu0 %v4535_v42  ;;  %2557 = vmatpush1.bf16.msra.mxu1 %v4538_v43  ;;  %v4604_v42 = vld [vmem:[#allocation7 + $0x3c8] ss:$16 sps:$4 sm:$0xff]   ;;  %v4609_v43 = vld [vmem:[#allocation7 + $0x3e4] ss:$16 sps:$4 sm:$0xff]  }
 0x1ce   :  { %2394 = vmatprep.subr.bf16.mxu0 %v4543_v44  ;;  %2558 = vmatprep.subr.bf16.mxu1 %v4546_v45  ;;  %v5548_v50 = vpop.f32.mrb[4].mxu0  ;;  %v4612_v44 = vld [vmem:[#allocation7 + $0x3ec] ss:$16 sps:$4 sm:$0xff]   ;;  %v4988_v45 = vpop.eup %4987 }
 0x1cf   :  { %v5550_v51 = vpop.f32.mrb[5].mxu0  ;;  %v5557_v26 = vpop.f32.mrb[4].mxu1 }
 0x1d0   :  { %v727_v52 = vpop.f32.mrb[6].mxu0  ;;  %v5560_v30 = vpop.f32.mrb[5].mxu1  ;;  %v726_v38 = vadd.f32 %v5550_v51, %v270_v29  ;;  %v4663_v29 = vld [vmem:[#allocation7 + $0x504] ss:$16 sps:$4 sm:$0xff]  }
 0x1d1   :  { %2395 = vmatpush1.bf16.msra.mxu0 %v4541_v46  ;;  %2559 = vmatpush1.bf16.msra.mxu1 %v4544_v47  ;;  %v728_v55 = vpop.f32.mrb[7].mxu0  ;;  %v768_v32 = vpop.f32.mrb[6].mxu1  ;;  %v4607_v46 = vld [vmem:[#allocation7 + $0x3e0] ss:$16 sps:$4 sm:$0xff]   ;;  %v4610_v47 = vld [vmem:[#allocation7 + $0x3e8] ss:$16 sps:$4 sm:$0xff]   ;;  %v781_v52 = vpack.c.bf16 %v4988_v45, %v4988_v45 }
 0x1d2   :  { %2396 = vmatprep.subr.bf16.mxu0 %v4549_v48  ;;  %2560 = vmatprep.subr.bf16.mxu1 %v4552_v49  ;;  %v769_v33 = vpop.f32.mrb[7].mxu1  ;;  %4989 = vtanh.f32 %v726_v38  ;;  %v4615_v48 = vld [vmem:[#allocation7 + $0x404] ss:$16 sps:$4 sm:$0xff]   ;;  %v4618_v49 = vld [vmem:[#allocation7 + $0x40c] ss:$16 sps:$4 sm:$0xff]  }
 0x1d3   :  { %v4621_v55 = vld [vmem:[#allocation7 + $0x424] ss:$16 sps:$4 sm:$0xff]   ;;  %v4661_v32 = vld [vmem:[#allocation7 + $0x500] ss:$16 sps:$4 sm:$0xff]   ;;  %v4664_v33 = vld [vmem:[#allocation7 + $0x508] ss:$16 sps:$4 sm:$0xff]  }
 0x1d4   :  { %v4675_v38 = vld [vmem:[#allocation7 + $0x544] ss:$16 sps:$4 sm:$0xff]   ;;  %v4679_v45 = vld [vmem:[#allocation7 + $0x560] ss:$16 sps:$4 sm:$0xff]  }
 0x1d5   :  { %2397 = vmatpush1.bf16.msra.mxu0 %v4547_v53  ;;  %2561 = vmatpush1.bf16.msra.mxu1 %v4550_v54  ;;  %v4613_v53 = vld [vmem:[#allocation7 + $0x400] ss:$16 sps:$4 sm:$0xff]   ;;  %v4616_v54 = vld [vmem:[#allocation7 + $0x408] ss:$16 sps:$4 sm:$0xff]  }
 0x1d6   :  { %2398 = vmatprep.subr.bf16.mxu0 %v4555_v56  ;;  %2562 = vmatprep.subr.bf16.mxu1 %v4558_v57  ;;  %v4624_v56 = vld [vmem:[#allocation7 + $0x42c] ss:$16 sps:$4 sm:$0xff]  }
 0x1d9   :  { %2399 = vmatpush1.bf16.msra.mxu0 %v4553_v58  ;;  %2563 = vmatpush1.bf16.msra.mxu1 %v4556_v59  ;;  %v4619_v58 = vld [vmem:[#allocation7 + $0x420] ss:$16 sps:$4 sm:$0xff]   ;;  %v4622_v59 = vld [vmem:[#allocation7 + $0x428] ss:$16 sps:$4 sm:$0xff]  }
 0x1da   :  { %2400 = vmatprep.subr.bf16.mxu0 %v4561_v60  ;;  %2564 = vmatprep.subr.bf16.mxu1 %v4564_v61  ;;  %v4627_v60 = vld [vmem:[#allocation7 + $0x444] ss:$16 sps:$4 sm:$0xff]   ;;  %v4630_v61 = vld [vmem:[#allocation7 + $0x44c] ss:$16 sps:$4 sm:$0xff]  }
 0x1dc   :  { %v4990_v51 = vpop.eup %4989 }
 0x1dd   :  { %2401 = vmatpush1.bf16.msra.mxu0 %v4559_v62  ;;  %2565 = vmatpush1.bf16.msra.mxu1 %v4562_v63  ;;  %v784_v57 = vpack.c.bf16 %v4990_v51, %v4990_v51  ;;  %v4625_v62 = vld [vmem:[#allocation7 + $0x440] ss:$16 sps:$4 sm:$0xff]   ;;  %v4628_v63 = vld [vmem:[#allocation7 + $0x448] ss:$16 sps:$4 sm:$0xff]  }
 0x1de   :  { %2402 = vmatprep.subr.bf16.mxu0 %v4567_v1  ;;  %2566 = vmatprep.subr.bf16.mxu1 %v4570_v3  ;;  %v4633_v1 = vld [vmem:[#allocation7 + $0x464] ss:$16 sps:$4 sm:$0xff]   ;;  %v4636_v3 = vld [vmem:[#allocation7 + $0x46c] ss:$16 sps:$4 sm:$0xff]  }
 0x1e1   :  { %2403 = vmatpush1.bf16.msra.mxu0 %v4565_v4  ;;  %2567 = vmatpush1.bf16.msra.mxu1 %v4568_v5  ;;  %v4631_v4 = vld [vmem:[#allocation7 + $0x460] ss:$16 sps:$4 sm:$0xff]   ;;  %v4634_v5 = vld [vmem:[#allocation7 + $0x468] ss:$16 sps:$4 sm:$0xff]  }
 0x1e2   :  { %2404 = vmatprep.subr.bf16.mxu0 %v4573_v6  ;;  %2568 = vmatprep.subr.bf16.mxu1 %v4576_v11  ;;  %v4639_v6 = vld [vmem:[#allocation7 + $0x484] ss:$16 sps:$4 sm:$0xff]   ;;  %v4642_v11 = vld [vmem:[#allocation7 + $0x48c] ss:$16 sps:$4 sm:$0xff]  }
 0x1e5   :  { %2405 = vmatpush1.bf16.msra.mxu0 %v4571_v12  ;;  %2569 = vmatpush1.bf16.msra.mxu1 %v4574_v13  ;;  %v4637_v12 = vld [vmem:[#allocation7 + $0x480] ss:$16 sps:$4 sm:$0xff]   ;;  %v4640_v13 = vld [vmem:[#allocation7 + $0x488] ss:$16 sps:$4 sm:$0xff]  }
 0x1e6   :  { %2406 = vmatprep.subr.bf16.mxu0 %v4579_v15  ;;  %2570 = vmatprep.subr.bf16.mxu1 %v4582_v16  ;;  %v4645_v15 = vld [vmem:[#allocation7 + $0x4a4] ss:$16 sps:$4 sm:$0xff]   ;;  %v4648_v16 = vld [vmem:[#allocation7 + $0x4ac] ss:$16 sps:$4 sm:$0xff]  }
 0x1e9   :  { %2407 = vmatpush1.bf16.msra.mxu0 %v4577_v18  ;;  %2571 = vmatpush1.bf16.msra.mxu1 %v4580_v19  ;;  %v4643_v18 = vld [vmem:[#allocation7 + $0x4a0] ss:$16 sps:$4 sm:$0xff]   ;;  %v4646_v19 = vld [vmem:[#allocation7 + $0x4a8] ss:$16 sps:$4 sm:$0xff]  }
 0x1ea   :  { %2408 = vmatprep.subr.bf16.mxu0 %v4585_v20  ;;  %2572 = vmatprep.subr.bf16.mxu1 %v4588_v22  ;;  %v4651_v20 = vld [vmem:[#allocation7 + $0x4c4] ss:$16 sps:$4 sm:$0xff]   ;;  %v4654_v22 = vld [vmem:[#allocation7 + $0x4cc] ss:$16 sps:$4 sm:$0xff]  }
 0x1ed   :  { %2409 = vmatpush1.bf16.msra.mxu0 %v4583_v24  ;;  %2573 = vmatpush1.bf16.msra.mxu1 %v4586_v25  ;;  %v4657_v24 = vld [vmem:[#allocation7 + $0x4e4] ss:$16 sps:$4 sm:$0xff]   ;;  %v4660_v25 = vld [vmem:[#allocation7 + $0x4ec] ss:$16 sps:$4 sm:$0xff]  }
 0x1ee   :  { %2410 = vmatprep.subr.bf16.mxu0 %v4591_v27  ;;  %2574 = vmatprep.subr.bf16.mxu1 %v4594_v28  ;;  %v4655_v27 = vld [vmem:[#allocation7 + $0x4e0] ss:$16 sps:$4 sm:$0xff]   ;;  %v4658_v28 = vld [vmem:[#allocation7 + $0x4e8] ss:$16 sps:$4 sm:$0xff]  }
 0x1f1   :  { %2411 = vmatpush1.bf16.msra.mxu0 %v4589_v34  ;;  %2575 = vmatpush1.bf16.msra.mxu1 %v4592_v35  ;;  %v4669_v34 = vld [vmem:[#allocation7 + $0x524] ss:$16 sps:$4 sm:$0xff]   ;;  %v4672_v35 = vld [vmem:[#allocation7 + $0x52c] ss:$16 sps:$4 sm:$0xff]  }
 0x1f2   :  { %2412 = vmatprep.subr.bf16.mxu0 %v4597_v36  ;;  %2576 = vmatprep.subr.bf16.mxu1 %v4600_v37  ;;  %v4667_v36 = vld [vmem:[#allocation7 + $0x520] ss:$16 sps:$4 sm:$0xff]   ;;  %v4670_v37 = vld [vmem:[#allocation7 + $0x528] ss:$16 sps:$4 sm:$0xff]  }
 0x1f5   :  { %2413 = vmatpush1.bf16.msra.mxu0 %v4595_v39  ;;  %2577 = vmatpush1.bf16.msra.mxu1 %v4598_v40  ;;  %v4678_v39 = vld [vmem:[#allocation7 + $0x54c] ss:$16 sps:$4 sm:$0xff]   ;;  %v265_v40 = vsub.s32 4, %v5528_v7 }
 0x1f6   :  { %2414 = vmatprep.subr.bf16.mxu0 %v4603_v21  ;;  %2578 = vmatprep.subr.bf16.mxu1 %v4606_v41  ;;  %v4673_v21 = vld [vmem:[#allocation7 + $0x540] ss:$16 sps:$4 sm:$0xff]   ;;  %v4676_v41 = vld [vmem:[#allocation7 + $0x548] ss:$16 sps:$4 sm:$0xff]  }
 0x1f9   :  { %2415 = vmatpush1.bf16.msra.mxu0 %v4601_v0  ;;  %2579 = vmatpush1.bf16.msra.mxu1 %v4604_v42  ;;  %v4681_v0 = vld [vmem:[#allocation7 + $0x564] ss:$16 sps:$4 sm:$0xff]   ;;  %v4684_v42 = vld [vmem:[#allocation7 + $0x56c] ss:$16 sps:$4 sm:$0xff]  }
 0x1fa   :  { %2416 = vmatprep.subr.bf16.mxu0 %v4609_v43  ;;  %2580 = vmatprep.subr.bf16.mxu1 %v4612_v44  ;;  %v277_v43 = vsub.s32 7, %v5528_v7  ;;  %v266_v44 = vrot.slane %v5533_v9, %v265_v40  ;;  %v4750_v40 = vld [vmem:[#allocation7 + $0x6cc] ss:$16 sps:$4 sm:$0xff]  }
 0x1fc   :  { %v724_v51 = vadd.f32 %v5548_v50, %v266_v44  ;;  %v4697_v50 = vld [vmem:[#allocation7 + $0x5c0] ss:$16 sps:$4 sm:$0xff]   ;;  %v4754_v44 = vld [vmem:[#allocation7 + $0x6e8] ss:$16 sps:$4 sm:$0xff]  }
 0x1fd   :  { %2417 = vmatpush1.bf16.msra.mxu0 %v4607_v46  ;;  %2581 = vmatpush1.bf16.msra.mxu1 %v4610_v47  ;;  %v4682_v46 = vld [vmem:[#allocation7 + $0x568] ss:$16 sps:$4 sm:$0xff]   ;;  %v4687_v47 = vld [vmem:[#allocation7 + $0x584] ss:$16 sps:$4 sm:$0xff]  }
 0x1fe   :  { %2427 = vmatprep.subr.bf16.mxu0 %v4615_v48  ;;  %2591 = vmatprep.subr.bf16.mxu1 %v4618_v49  ;;  %v4690_v48 = vld [vmem:[#allocation7 + $0x58c] ss:$16 sps:$4 sm:$0xff]   ;;  %v278_v49 = vrot.slane %v5533_v9, %v277_v43  ;;  %4991 = vtanh.f32 %v724_v51  ;;  %v4751_v43 = vld [vmem:[#allocation7 + $0x6e0] ss:$16 sps:$4 sm:$0xff]  }
 0x1ff   :  { %v4768_v51 = vld [vmem:[#allocation7 + $0x72c] ss:$16 sps:$4 sm:$0xff]  }
 0x200   :  { %2419 = vmatmul.mubr.bf16.vlgmr.msra.gmra.mrb[8].mxu0 %v781_v52  ;;  %2583 = vmatmul.mubr.bf16.vlgmr.msra.gmra.mrb[8].mxu1 %v781_v52  ;;  %v4685_v52 = vld [vmem:[#allocation7 + $0x580] ss:$16 sps:$4 sm:$0xff]  }
 0x201   :  { %2428 = vmatpush1.bf16.msra.mxu0 %v4613_v53  ;;  %2592 = vmatpush1.bf16.msra.mxu1 %v4616_v54  ;;  %v4688_v53 = vld [vmem:[#allocation7 + $0x588] ss:$16 sps:$4 sm:$0xff]   ;;  %v4693_v54 = vld [vmem:[#allocation7 + $0x5a4] ss:$16 sps:$4 sm:$0xff]  }
 0x202   :  { %2429 = vmatprep.subr.bf16.mxu0 %v4621_v55  ;;  %2593 = vmatprep.subr.bf16.mxu1 %v4624_v56  ;;  %v4696_v55 = vld [vmem:[#allocation7 + $0x5ac] ss:$16 sps:$4 sm:$0xff]   ;;  %v767_v56 = vadd.f32 %v5560_v30, %v278_v49  ;;  %v4703_v30 = vld [vmem:[#allocation7 + $0x5e0] ss:$16 sps:$4 sm:$0xff]   ;;  %v4765_v49 = vld [vmem:[#allocation7 + $0x724] ss:$16 sps:$4 sm:$0xff]  }
 0x203   :  { %2459 = vmatprep.mubr.bf16.mxu0 %v784_v57  ;;  %2623 = vmatprep.mubr.bf16.mxu1 %v784_v57  ;;  %v4691_v57 = vld [vmem:[#allocation7 + $0x5a0] ss:$16 sps:$4 sm:$0xff]  }
 0x204   :  { %4993 = vtanh.f32 %v767_v56  ;;  %v4769_v56 = vld [vmem:[#allocation7 + $0x740] ss:$16 sps:$4 sm:$0xff]  }
 0x205   :  { %2430 = vmatpush1.bf16.msra.mxu0 %v4619_v58  ;;  %2594 = vmatpush1.bf16.msra.mxu1 %v4622_v59  ;;  %v4694_v58 = vld [vmem:[#allocation7 + $0x5a8] ss:$16 sps:$4 sm:$0xff]   ;;  %v4699_v59 = vld [vmem:[#allocation7 + $0x5c4] ss:$16 sps:$4 sm:$0xff]  }
 0x206   :  { %2431 = vmatprep.subr.bf16.mxu0 %v4627_v60  ;;  %2595 = vmatprep.subr.bf16.mxu1 %v4630_v61  ;;  %v4702_v60 = vld [vmem:[#allocation7 + $0x5cc] ss:$16 sps:$4 sm:$0xff]   ;;  %v4700_v61 = vld [vmem:[#allocation7 + $0x5c8] ss:$16 sps:$4 sm:$0xff]  }
 0x209   :  { %2432 = vmatpush1.bf16.msra.mxu0 %v4625_v62  ;;  %2596 = vmatpush1.bf16.msra.mxu1 %v4628_v63  ;;  %v4705_v62 = vld [vmem:[#allocation7 + $0x5e4] ss:$16 sps:$4 sm:$0xff]   ;;  %v4708_v63 = vld [vmem:[#allocation7 + $0x5ec] ss:$16 sps:$4 sm:$0xff]  }
 0x20a   :  { %2433 = vmatprep.subr.bf16.mxu0 %v4633_v1  ;;  %2597 = vmatprep.subr.bf16.mxu1 %v4636_v3  ;;  %v4992_v1 = vpop.eup %4991  ;;  %v4706_v3 = vld [vmem:[#allocation7 + $0x5e8] ss:$16 sps:$4 sm:$0xff]  }
 0x20d   :  { %2434 = vmatpush1.bf16.msra.mxu0 %v4631_v4  ;;  %2598 = vmatpush1.bf16.msra.mxu1 %v4634_v5  ;;  %v4711_v4 = vld [vmem:[#allocation7 + $0x604] ss:$16 sps:$4 sm:$0xff]   ;;  %v4714_v5 = vld [vmem:[#allocation7 + $0x60c] ss:$16 sps:$4 sm:$0xff]  }
 0x20e   :  { %2435 = vmatprep.subr.bf16.mxu0 %v4639_v6  ;;  %2599 = vmatprep.subr.bf16.mxu1 %v4642_v11  ;;  %v4994_v6 = vpop.eup %4993  ;;  %v783_v11 = vpack.c.bf16 %v4992_v1, %v4992_v1  ;;  %v4786_v1 = vld [vmem:[#allocation7 + $0x78c] ss:$16 sps:$4 sm:$0xff]  }
 0x211   :  { %2436 = vmatpush1.bf16.msra.mxu0 %v4637_v12  ;;  %2600 = vmatpush1.bf16.msra.mxu1 %v4640_v13  ;;  %v4709_v12 = vld [vmem:[#allocation7 + $0x600] ss:$16 sps:$4 sm:$0xff]   ;;  %v4712_v13 = vld [vmem:[#allocation7 + $0x608] ss:$16 sps:$4 sm:$0xff]  }
 0x212   :  { %2437 = vmatprep.subr.bf16.mxu0 %v4645_v15  ;;  %2601 = vmatprep.subr.bf16.mxu1 %v4648_v16  ;;  %v4717_v15 = vld [vmem:[#allocation7 + $0x624] ss:$16 sps:$4 sm:$0xff]   ;;  %v4720_v16 = vld [vmem:[#allocation7 + $0x62c] ss:$16 sps:$4 sm:$0xff]  }
 0x215   :  { %2438 = vmatpush1.bf16.msra.mxu0 %v4643_v18  ;;  %2602 = vmatpush1.bf16.msra.mxu1 %v4646_v19  ;;  %v786_v18 = vpack.c.bf16 %v4994_v6, %v4994_v6  ;;  %v4715_v19 = vld [vmem:[#allocation7 + $0x620] ss:$16 sps:$4 sm:$0xff]   ;;  %v4792_v6 = vld [vmem:[#allocation7 + $0x7ac] ss:$16 sps:$4 sm:$0xff]  }
 0x216   :  { %2439 = vmatprep.subr.bf16.mxu0 %v4651_v20  ;;  %2603 = vmatprep.subr.bf16.mxu1 %v4654_v22  ;;  %v4718_v20 = vld [vmem:[#allocation7 + $0x628] ss:$16 sps:$4 sm:$0xff]   ;;  %v4723_v22 = vld [vmem:[#allocation7 + $0x644] ss:$16 sps:$4 sm:$0xff]  }
 0x219   :  { %2440 = vmatpush1.bf16.msra.mxu0 %v4649_v23  ;;  %2604 = vmatpush1.bf16.msra.mxu1 %v4652_v2  ;;  %v4726_v23 = vld [vmem:[#allocation7 + $0x64c] ss:$16 sps:$4 sm:$0xff]   ;;  %v4721_v2 = vld [vmem:[#allocation7 + $0x640] ss:$16 sps:$4 sm:$0xff]  }
 0x21a   :  { %2441 = vmatprep.subr.bf16.mxu0 %v4657_v24  ;;  %2605 = vmatprep.subr.bf16.mxu1 %v4660_v25  ;;  %v4724_v24 = vld [vmem:[#allocation7 + $0x648] ss:$16 sps:$4 sm:$0xff]   ;;  %v4729_v25 = vld [vmem:[#allocation7 + $0x664] ss:$16 sps:$4 sm:$0xff]  }
 0x21d   :  { %2442 = vmatpush1.bf16.msra.mxu0 %v4655_v27  ;;  %2606 = vmatpush1.bf16.msra.mxu1 %v4658_v28  ;;  %v4732_v27 = vld [vmem:[#allocation7 + $0x66c] ss:$16 sps:$4 sm:$0xff]   ;;  %v4727_v28 = vld [vmem:[#allocation7 + $0x660] ss:$16 sps:$4 sm:$0xff]  }
 0x21e   :  { %2443 = vmatprep.subr.bf16.mxu0 %v4663_v29  ;;  %2607 = vmatprep.subr.bf16.mxu1 %v4666_v31  ;;  %v4730_v29 = vld [vmem:[#allocation7 + $0x668] ss:$16 sps:$4 sm:$0xff]   ;;  %v4735_v31 = vld [vmem:[#allocation7 + $0x684] ss:$16 sps:$4 sm:$0xff]  }
 0x221   :  { %2444 = vmatpush1.bf16.msra.mxu0 %v4661_v32  ;;  %2608 = vmatpush1.bf16.msra.mxu1 %v4664_v33  ;;  %v4738_v32 = vld [vmem:[#allocation7 + $0x68c] ss:$16 sps:$4 sm:$0xff]   ;;  %v4733_v33 = vld [vmem:[#allocation7 + $0x680] ss:$16 sps:$4 sm:$0xff]  }
 0x222   :  { %2445 = vmatprep.subr.bf16.mxu0 %v4669_v34  ;;  %2609 = vmatprep.subr.bf16.mxu1 %v4672_v35  ;;  %v4736_v34 = vld [vmem:[#allocation7 + $0x688] ss:$16 sps:$4 sm:$0xff]   ;;  %v4741_v35 = vld [vmem:[#allocation7 + $0x6a4] ss:$16 sps:$4 sm:$0xff]  }
 0x225   :  { %2446 = vmatpush1.bf16.msra.mxu0 %v4667_v36  ;;  %2610 = vmatpush1.bf16.msra.mxu1 %v4670_v37  ;;  %v4744_v36 = vld [vmem:[#allocation7 + $0x6ac] ss:$16 sps:$4 sm:$0xff]   ;;  %v4739_v37 = vld [vmem:[#allocation7 + $0x6a0] ss:$16 sps:$4 sm:$0xff]  }
 0x226   :  { %2447 = vmatprep.subr.bf16.mxu0 %v4675_v38  ;;  %2611 = vmatprep.subr.bf16.mxu1 %v4678_v39  ;;  %v4742_v38 = vld [vmem:[#allocation7 + $0x6a8] ss:$16 sps:$4 sm:$0xff]   ;;  %v4747_v39 = vld [vmem:[#allocation7 + $0x6c4] ss:$16 sps:$4 sm:$0xff]  }
 0x229   :  { %2448 = vmatpush1.bf16.msra.mxu0 %v4673_v21  ;;  %2612 = vmatpush1.bf16.msra.mxu1 %v4676_v41  ;;  %v4745_v21 = vld [vmem:[#allocation7 + $0x6c0] ss:$16 sps:$4 sm:$0xff]   ;;  %v4748_v41 = vld [vmem:[#allocation7 + $0x6c8] ss:$16 sps:$4 sm:$0xff]  }
 0x22a   :  { %2449 = vmatprep.subr.bf16.mxu0 %v4681_v0  ;;  %2613 = vmatprep.subr.bf16.mxu1 %v4684_v42  ;;  %v4753_v0 = vld [vmem:[#allocation7 + $0x6e4] ss:$16 sps:$4 sm:$0xff]   ;;  %v4756_v42 = vld [vmem:[#allocation7 + $0x6ec] ss:$16 sps:$4 sm:$0xff]  }
 0x22d   :  { %2450 = vmatpush1.bf16.msra.mxu0 %v4679_v45  ;;  %2614 = vmatpush1.bf16.msra.mxu1 %v4682_v46  ;;  %v4759_v45 = vld [vmem:[#allocation7 + $0x704] ss:$16 sps:$4 sm:$0xff]   ;;  %v4762_v46 = vld [vmem:[#allocation7 + $0x70c] ss:$16 sps:$4 sm:$0xff]  }
 0x22e   :  { %2451 = vmatprep.subr.bf16.mxu0 %v4687_v47  ;;  %2615 = vmatprep.subr.bf16.mxu1 %v4690_v48  ;;  %v4757_v47 = vld [vmem:[#allocation7 + $0x700] ss:$16 sps:$4 sm:$0xff]   ;;  %v4760_v48 = vld [vmem:[#allocation7 + $0x708] ss:$16 sps:$4 sm:$0xff]  }
 0x231   :  { %2452 = vmatpush1.bf16.msra.mxu0 %v4685_v52  ;;  %2616 = vmatpush1.bf16.msra.mxu1 %v4688_v53  ;;  %v4763_v52 = vld [vmem:[#allocation7 + $0x720] ss:$16 sps:$4 sm:$0xff]   ;;  %v4766_v53 = vld [vmem:[#allocation7 + $0x728] ss:$16 sps:$4 sm:$0xff]  }
 0x232   :  { %2453 = vmatprep.subr.bf16.mxu0 %v4693_v54  ;;  %2617 = vmatprep.subr.bf16.mxu1 %v4696_v55  ;;  %v4771_v54 = vld [vmem:[#allocation7 + $0x744] ss:$16 sps:$4 sm:$0xff]   ;;  %v4774_v55 = vld [vmem:[#allocation7 + $0x74c] ss:$16 sps:$4 sm:$0xff]  }
 0x235   :  { %2454 = vmatpush1.bf16.msra.mxu0 %v4691_v57  ;;  %2618 = vmatpush1.bf16.msra.mxu1 %v4694_v58  ;;  %v4772_v57 = vld [vmem:[#allocation7 + $0x748] ss:$16 sps:$4 sm:$0xff]   ;;  %v273_v58 = vsub.s32 6, %v5528_v7  ;;  %v4900_v7 = vld [vmem:[#allocation8 + $0x1f4] ss:$8 sps:$4 sm:$0xff]  }
 0x236   :  { %2455 = vmatprep.subr.bf16.mxu0 %v4699_v59  ;;  %2619 = vmatprep.subr.bf16.mxu1 %v4702_v60  ;;  %v4777_v59 = vld [vmem:[#allocation7 + $0x764] ss:$16 sps:$4 sm:$0xff]   ;;  %v4780_v60 = vld [vmem:[#allocation7 + $0x76c] ss:$16 sps:$4 sm:$0xff]  }
 0x239   :  { %2456 = vmatpush1.bf16.msra.mxu0 %v4697_v50  ;;  %2620 = vmatpush1.bf16.msra.mxu1 %v4700_v61  ;;  %v274_v50 = vrot.slane %v5533_v9, %v273_v58  ;;  %v4775_v61 = vld [vmem:[#allocation7 + $0x760] ss:$16 sps:$4 sm:$0xff]   ;;  %v4903_v58 = vld [vmem:[#allocation10 + $0x4] ss:$8 sps:$4 sm:$0xff]  }
 0x23a   :  { %2457 = vmatprep.subr.bf16.mxu0 %v4705_v62  ;;  %2621 = vmatprep.subr.bf16.mxu1 %v4708_v63  ;;  %v4778_v62 = vld [vmem:[#allocation7 + $0x768] ss:$16 sps:$4 sm:$0xff]   ;;  %v4783_v63 = vld [vmem:[#allocation7 + $0x784] ss:$16 sps:$4 sm:$0xff]   ;;  %v4787_v9 = vld [vmem:[#allocation7 + $0x7a0] ss:$16 sps:$4 sm:$0xff]  }
 0x23d   :  { %2458 = vmatpush1.bf16.msra.mxu0 %v4703_v30  ;;  %2622 = vmatpush1.bf16.msra.mxu1 %v4706_v3  ;;  %v765_v30 = vadd.f32 %v5557_v26, %v274_v50  ;;  %v4781_v3 = vld [vmem:[#allocation7 + $0x780] ss:$16 sps:$4 sm:$0xff]   ;;  %v4909_v50 = vld [vmem:[#allocation10 + $0x24] ss:$8 sps:$4 sm:$0xff]  }
 0x23e   :  { %2468 = vmatprep.subr.bf16.mxu0 %v4711_v4  ;;  %2632 = vmatprep.subr.bf16.mxu1 %v4714_v5  ;;  %v4784_v4 = vld [vmem:[#allocation7 + $0x788] ss:$16 sps:$4 sm:$0xff]   ;;  %v4789_v5 = vld [vmem:[#allocation7 + $0x7a4] ss:$16 sps:$4 sm:$0xff]   ;;  %v4793_v26 = vld [vmem:[#allocation7 + $0x7c0] ss:$16 sps:$4 sm:$0xff]  }
 0x23f   :  { %4995 = vtanh.f32 %v765_v30  ;;  %v4913_v30 = vld [vmem:[#allocation10 + $0x40] ss:$8 sps:$4 sm:$0xff]  }
 0x240   :  { %2460 = vmatmul.mubr.bf16.vlgmr.msra.gmra.mrb[8].mxu0 %v783_v11  ;;  %2624 = vmatmul.mubr.bf16.vlgmr.msra.gmra.mrb[8].mxu1 %v783_v11  ;;  %v4790_v11 = vld [vmem:[#allocation7 + $0x7a8] ss:$16 sps:$4 sm:$0xff]  }
 0x241   :  { %2469 = vmatpush1.bf16.msra.mxu0 %v4709_v12  ;;  %2633 = vmatpush1.bf16.msra.mxu1 %v4712_v13  ;;  %v4795_v12 = vld [vmem:[#allocation7 + $0x7c4] ss:$16 sps:$4 sm:$0xff]   ;;  %v4798_v13 = vld [vmem:[#allocation7 + $0x7cc] ss:$16 sps:$4 sm:$0xff]  }
 0x242   :  { %2470 = vmatprep.subr.bf16.mxu0 %v4717_v15  ;;  %2634 = vmatprep.subr.bf16.mxu1 %v4720_v16  ;;  %v4796_v15 = vld [vmem:[#allocation7 + $0x7c8] ss:$16 sps:$4 sm:$0xff]   ;;  %v4801_v16 = vld [vmem:[#allocation7 + $0x7e4] ss:$16 sps:$4 sm:$0xff]  }
 0x243   :  { %2500 = vmatprep.mubr.bf16.mxu0 %v786_v18  ;;  %2664 = vmatprep.mubr.bf16.mxu1 %v786_v18  ;;  %v4804_v18 = vld [vmem:[#allocation7 + $0x7ec] ss:$16 sps:$4 sm:$0xff]  }
 0x245   :  { %2471 = vmatpush1.bf16.msra.mxu0 %v4715_v19  ;;  %2635 = vmatpush1.bf16.msra.mxu1 %v4718_v20  ;;  %v4799_v19 = vld [vmem:[#allocation7 + $0x7e0] ss:$16 sps:$4 sm:$0xff]   ;;  %v4802_v20 = vld [vmem:[#allocation7 + $0x7e8] ss:$16 sps:$4 sm:$0xff]  }
 0x246   :  { %2472 = vmatprep.subr.bf16.mxu0 %v4723_v22  ;;  %2636 = vmatprep.subr.bf16.mxu1 %v4726_v23  ;;  %v4807_v22 = vld [vmem:[#allocation8 + $0x4] ss:$8 sps:$4 sm:$0xff]  }
 0x249   :  { %2473 = vmatpush1.bf16.msra.mxu0 %v4721_v2  ;;  %2637 = vmatpush1.bf16.msra.mxu1 %v4724_v24  ;;  %v4996_v23 = vpop.eup %4995  ;;  %v4805_v2 = vld [vmem:[#allocation8] ss:$8 sps:$4 sm:$0xff]  }
 0x24a   :  { %2474 = vmatprep.subr.bf16.mxu0 %v4729_v25  ;;  %2638 = vmatprep.subr.bf16.mxu1 %v4732_v27  ;;  %v785_v24 = vpack.c.bf16 %v4996_v23, %v4996_v23  ;;  %v4810_v25 = vld [vmem:[#allocation8 + $0x14] ss:$8 sps:$4 sm:$0xff]   ;;  %v4808_v27 = vld [vmem:[#allocation8 + $0x10] ss:$8 sps:$4 sm:$0xff]  }
 0x24d   :  { %2475 = vmatpush1.bf16.msra.mxu0 %v4727_v28  ;;  %2639 = vmatpush1.bf16.msra.mxu1 %v4730_v29  ;;  %v4813_v28 = vld [vmem:[#allocation8 + $0x24] ss:$8 sps:$4 sm:$0xff]   ;;  %v4811_v29 = vld [vmem:[#allocation8 + $0x20] ss:$8 sps:$4 sm:$0xff]  }
 0x24e   :  { %2476 = vmatprep.subr.bf16.mxu0 %v4735_v31  ;;  %2640 = vmatprep.subr.bf16.mxu1 %v4738_v32  ;;  %v4816_v31 = vld [vmem:[#allocation8 + $0x34] ss:$8 sps:$4 sm:$0xff]   ;;  %v4814_v32 = vld [vmem:[#allocation8 + $0x30] ss:$8 sps:$4 sm:$0xff]  }
 0x251   :  { %2477 = vmatpush1.bf16.msra.mxu0 %v4733_v33  ;;  %2641 = vmatpush1.bf16.msra.mxu1 %v4736_v34  ;;  %v4819_v33 = vld [vmem:[#allocation8 + $0x44] ss:$8 sps:$4 sm:$0xff]   ;;  %v4817_v34 = vld [vmem:[#allocation8 + $0x40] ss:$8 sps:$4 sm:$0xff]  }
 0x252   :  { %2478 = vmatprep.subr.bf16.mxu0 %v4741_v35  ;;  %2642 = vmatprep.subr.bf16.mxu1 %v4744_v36  ;;  %v4822_v35 = vld [vmem:[#allocation8 + $0x54] ss:$8 sps:$4 sm:$0xff]   ;;  %v4820_v36 = vld [vmem:[#allocation8 + $0x50] ss:$8 sps:$4 sm:$0xff]  }
 0x255   :  { %2479 = vmatpush1.bf16.msra.mxu0 %v4739_v37  ;;  %2643 = vmatpush1.bf16.msra.mxu1 %v4742_v38  ;;  %v4825_v37 = vld [vmem:[#allocation8 + $0x64] ss:$8 sps:$4 sm:$0xff]   ;;  %v4823_v38 = vld [vmem:[#allocation8 + $0x60] ss:$8 sps:$4 sm:$0xff]  }
 0x256   :  { %2480 = vmatprep.subr.bf16.mxu0 %v4747_v39  ;;  %2644 = vmatprep.subr.bf16.mxu1 %v4750_v40  ;;  %v4828_v39 = vld [vmem:[#allocation8 + $0x74] ss:$8 sps:$4 sm:$0xff]   ;;  %v4826_v40 = vld [vmem:[#allocation8 + $0x70] ss:$8 sps:$4 sm:$0xff]  }
 0x259   :  { %2481 = vmatpush1.bf16.msra.mxu0 %v4745_v21  ;;  %2645 = vmatpush1.bf16.msra.mxu1 %v4748_v41  ;;  %v4831_v21 = vld [vmem:[#allocation8 + $0x84] ss:$8 sps:$4 sm:$0xff]   ;;  %v4829_v41 = vld [vmem:[#allocation8 + $0x80] ss:$8 sps:$4 sm:$0xff]  }
 0x25a   :  { %2482 = vmatprep.subr.bf16.mxu0 %v4753_v0  ;;  %2646 = vmatprep.subr.bf16.mxu1 %v4756_v42  ;;  %v4834_v0 = vld [vmem:[#allocation8 + $0x94] ss:$8 sps:$4 sm:$0xff]   ;;  %v4832_v42 = vld [vmem:[#allocation8 + $0x90] ss:$8 sps:$4 sm:$0xff]  }
 0x25d   :  { %2483 = vmatpush1.bf16.msra.mxu0 %v4751_v43  ;;  %2647 = vmatpush1.bf16.msra.mxu1 %v4754_v44  ;;  %v4837_v43 = vld [vmem:[#allocation8 + $0xa4] ss:$8 sps:$4 sm:$0xff]   ;;  %v4835_v44 = vld [vmem:[#allocation8 + $0xa0] ss:$8 sps:$4 sm:$0xff]  }
 0x25e   :  { %2484 = vmatprep.subr.bf16.mxu0 %v4759_v45  ;;  %2648 = vmatprep.subr.bf16.mxu1 %v4762_v46  ;;  %v4840_v45 = vld [vmem:[#allocation8 + $0xb4] ss:$8 sps:$4 sm:$0xff]   ;;  %v4838_v46 = vld [vmem:[#allocation8 + $0xb0] ss:$8 sps:$4 sm:$0xff]  }
 0x261   :  { %2485 = vmatpush1.bf16.msra.mxu0 %v4757_v47  ;;  %2649 = vmatpush1.bf16.msra.mxu1 %v4760_v48  ;;  %v4843_v47 = vld [vmem:[#allocation8 + $0xc4] ss:$8 sps:$4 sm:$0xff]   ;;  %v4841_v48 = vld [vmem:[#allocation8 + $0xc0] ss:$8 sps:$4 sm:$0xff]  }
 0x262   :  { %2486 = vmatprep.subr.bf16.mxu0 %v4765_v49  ;;  %2650 = vmatprep.subr.bf16.mxu1 %v4768_v51  ;;  %v4846_v49 = vld [vmem:[#allocation8 + $0xd4] ss:$8 sps:$4 sm:$0xff]   ;;  %v4844_v51 = vld [vmem:[#allocation8 + $0xd0] ss:$8 sps:$4 sm:$0xff]  }
 0x265   :  { %2487 = vmatpush1.bf16.msra.mxu0 %v4763_v52  ;;  %2651 = vmatpush1.bf16.msra.mxu1 %v4766_v53  ;;  %v4849_v52 = vld [vmem:[#allocation8 + $0xe4] ss:$8 sps:$4 sm:$0xff]   ;;  %v4847_v53 = vld [vmem:[#allocation8 + $0xe0] ss:$8 sps:$4 sm:$0xff]  }
 0x266   :  { %2488 = vmatprep.subr.bf16.mxu0 %v4771_v54  ;;  %2652 = vmatprep.subr.bf16.mxu1 %v4774_v55  ;;  %v4852_v54 = vld [vmem:[#allocation8 + $0xf4] ss:$8 sps:$4 sm:$0xff]   ;;  %v4850_v55 = vld [vmem:[#allocation8 + $0xf0] ss:$8 sps:$4 sm:$0xff]  }
 0x269   :  { %2489 = vmatpush1.bf16.msra.mxu0 %v4769_v56  ;;  %2653 = vmatpush1.bf16.msra.mxu1 %v4772_v57  ;;  %v4855_v56 = vld [vmem:[#allocation8 + $0x104] ss:$8 sps:$4 sm:$0xff]   ;;  %v4901_v57 = vld [vmem:[#allocation10] ss:$8 sps:$4 sm:$0xff]  }
 0x26a   :  { %2490 = vmatprep.subr.bf16.mxu0 %v4777_v59  ;;  %2654 = vmatprep.subr.bf16.mxu1 %v4780_v60  ;;  %v4906_v59 = vld [vmem:[#allocation10 + $0x14] ss:$8 sps:$4 sm:$0xff]   ;;  %v4904_v60 = vld [vmem:[#allocation10 + $0x10] ss:$8 sps:$4 sm:$0xff]  }
 0x26d   :  { %2491 = vmatpush1.bf16.msra.mxu0 %v4775_v61  ;;  %2655 = vmatpush1.bf16.msra.mxu1 %v4778_v62  ;;  %v4907_v61 = vld [vmem:[#allocation10 + $0x20] ss:$8 sps:$4 sm:$0xff]   ;;  %v4912_v62 = vld [vmem:[#allocation10 + $0x34] ss:$8 sps:$4 sm:$0xff]  }
 0x26e   :  { %2492 = vmatprep.subr.bf16.mxu0 %v4783_v63  ;;  %2656 = vmatprep.subr.bf16.mxu1 %v4786_v1  ;;  %v4910_v63 = vld [vmem:[#allocation10 + $0x30] ss:$8 sps:$4 sm:$0xff]   ;;  %v4915_v1 = vld [vmem:[#allocation10 + $0x44] ss:$8 sps:$4 sm:$0xff]  }
 0x271   :  { %2493 = vmatpush1.bf16.msra.mxu0 %v4781_v3  ;;  %2657 = vmatpush1.bf16.msra.mxu1 %v4784_v4  ;;  %v4918_v3 = vld [vmem:[#allocation10 + $0x54] ss:$8 sps:$4 sm:$0xff]   ;;  %v4916_v4 = vld [vmem:[#allocation10 + $0x50] ss:$8 sps:$4 sm:$0xff]  }
 0x272   :  { %2494 = vmatprep.subr.bf16.mxu0 %v4789_v5  ;;  %2658 = vmatprep.subr.bf16.mxu1 %v4792_v6  ;;  %v4921_v5 = vld [vmem:[#allocation10 + $0x64] ss:$8 sps:$4 sm:$0xff]   ;;  %v4919_v6 = vld [vmem:[#allocation10 + $0x60] ss:$8 sps:$4 sm:$0xff]  }
 0x275   :  { %2495 = vmatpush1.bf16.msra.mxu0 %v4787_v9  ;;  %2659 = vmatpush1.bf16.msra.mxu1 %v4790_v11  ;;  %v4924_v9 = vld [vmem:[#allocation10 + $0x74] ss:$8 sps:$4 sm:$0xff]   ;;  %v4922_v11 = vld [vmem:[#allocation10 + $0x70] ss:$8 sps:$4 sm:$0xff]  }
 0x276   :  { %2496 = vmatprep.subr.bf16.mxu0 %v4795_v12  ;;  %2660 = vmatprep.subr.bf16.mxu1 %v4798_v13  ;;  %v4927_v12 = vld [vmem:[#allocation10 + $0x84] ss:$8 sps:$4 sm:$0xff]   ;;  %v4925_v13 = vld [vmem:[#allocation10 + $0x80] ss:$8 sps:$4 sm:$0xff]  }
 0x279   :  { %2497 = vmatpush1.bf16.msra.mxu0 %v4793_v26  ;;  %2661 = vmatpush1.bf16.msra.mxu1 %v4796_v15  ;;  %v4930_v26 = vld [vmem:[#allocation10 + $0x94] ss:$8 sps:$4 sm:$0xff]   ;;  %v4928_v15 = vld [vmem:[#allocation10 + $0x90] ss:$8 sps:$4 sm:$0xff]  }
 0x27a   :  { %2498 = vmatprep.subr.bf16.mxu0 %v4801_v16  ;;  %2662 = vmatprep.subr.bf16.mxu1 %v4804_v18  ;;  %v4933_v16 = vld [vmem:[#allocation10 + $0xa4] ss:$8 sps:$4 sm:$0xff]   ;;  %v5576_v18 = vld [vmem:[%s5659_s4] sm:$0xf] }
 0x27b   :  { %v1052_v23 = vrot.slane %v5576_v18, %v5536_v10 }
 0x27d   :  { %2499 = vmatpush1.bf16.msra.mxu0 %v4799_v19  ;;  %2663 = vmatpush1.bf16.msra.mxu1 %v4802_v20  ;;  %v4931_v19 = vld [vmem:[#allocation10 + $0xa0] ss:$8 sps:$4 sm:$0xff]   ;;  %v4936_v20 = vld [vmem:[#allocation10 + $0xb4] ss:$8 sps:$4 sm:$0xff]  }
 0x27e   :  { %3077 = vmatprep.subr.bf16.mxu0 %v4807_v22  ;;  %3367 = vmatprep.subr.bf16.mxu1 %v4903_v58  ;;  %v1048_v22 = vrot.slane %v5576_v18, %v5531_v8  ;;  %v4877_v58 = vld [vmem:[#allocation8 + $0x180] ss:$8 sps:$4 sm:$0xff]  }
 0x280   :  { %2501 = vmatmul.mubr.bf16.vlgmr.msra.gmra.mrb[8].mxu0 %v785_v24  ;;  %2665 = vmatmul.mubr.bf16.vlgmr.msra.gmra.mrb[8].mxu1 %v785_v24  ;;  %v4934_v24 = vld [vmem:[#allocation10 + $0xb0] ss:$8 sps:$4 sm:$0xff]  }
 0x281   :  { %3078 = vmatpush1.bf16.msra.mxu0 %v4805_v2  ;;  %3368 = vmatpush1.bf16.msra.mxu1 %v4901_v57  ;;  %v1060_v2 = vrot.slane %v5576_v18, %v261_v14  ;;  %v4879_v57 = vld [vmem:[#allocation8 + $0x184] ss:$8 sps:$4 sm:$0xff]  }
 0x282   :  { %3079 = vmatprep.subr.bf16.mxu0 %v4810_v25  ;;  %3369 = vmatprep.subr.bf16.mxu1 %v4906_v59  ;;  %v4882_v59 = vld [vmem:[#allocation8 + $0x194] ss:$8 sps:$4 sm:$0xff]  }
 0x285   :  { %3080 = vmatpush1.bf16.msra.mxu0 %v4808_v27  ;;  %3370 = vmatpush1.bf16.msra.mxu1 %v4904_v60  ;;  %v4880_v60 = vld [vmem:[#allocation8 + $0x190] ss:$8 sps:$4 sm:$0xff]  }
 0x286   :  { %3081 = vmatprep.subr.bf16.mxu0 %v4813_v28  ;;  %3371 = vmatprep.subr.bf16.mxu1 %v4909_v50  ;;  %v4885_v50 = vld [vmem:[#allocation8 + $0x1a4] ss:$8 sps:$4 sm:$0xff]  }
 0x289   :  { %3082 = vmatpush1.bf16.msra.mxu0 %v4811_v29  ;;  %3372 = vmatpush1.bf16.msra.mxu1 %v4907_v61  ;;  %v4883_v61 = vld [vmem:[#allocation8 + $0x1a0] ss:$8 sps:$4 sm:$0xff]  }
 0x28a   :  { %3083 = vmatprep.subr.bf16.mxu0 %v4816_v31  ;;  %3373 = vmatprep.subr.bf16.mxu1 %v4912_v62  ;;  %v4888_v62 = vld [vmem:[#allocation8 + $0x1b4] ss:$8 sps:$4 sm:$0xff]  }
 0x28d   :  { %3084 = vmatpush1.bf16.msra.mxu0 %v4814_v32  ;;  %3374 = vmatpush1.bf16.msra.mxu1 %v4910_v63  ;;  %v1056_v63 = vrot.slane %v5576_v18, %v257_v17  ;;  %v4898_v17 = vld [vmem:[#allocation8 + $0x1f0] ss:$8 sps:$4 sm:$0xff]  }
 0x28e   :  { %3085 = vmatprep.subr.bf16.mxu0 %v4819_v33  ;;  %3375 = vmatprep.subr.bf16.mxu1 %v4915_v1  ;;  %v4886_v1 = vld [vmem:[#allocation8 + $0x1b0] ss:$8 sps:$4 sm:$0xff]  }
 0x28f   :  { %v4940_v18 = vld [vmem:[#allocation10 + $0xd0] ss:$8 sps:$4 sm:$0xff]  }
 0x291   :  { %3086 = vmatpush1.bf16.msra.mxu0 %v4817_v34  ;;  %3376 = vmatpush1.bf16.msra.mxu1 %v4913_v30  ;;  %v4891_v30 = vld [vmem:[#allocation8 + $0x1c4] ss:$8 sps:$4 sm:$0xff]  }
 0x292   :  { %3087 = vmatprep.subr.bf16.mxu0 %v4822_v35  ;;  %3377 = vmatprep.subr.bf16.mxu1 %v4918_v3 }
 0x295   :  { %3088 = vmatpush1.bf16.msra.mxu0 %v4820_v36  ;;  %3378 = vmatpush1.bf16.msra.mxu1 %v4916_v4  ;;  %v4889_v4 = vld [vmem:[#allocation8 + $0x1c0] ss:$8 sps:$4 sm:$0xff]  }
 0x296   :  { %3089 = vmatprep.subr.bf16.mxu0 %v4825_v37  ;;  %3379 = vmatprep.subr.bf16.mxu1 %v4921_v5  ;;  %v4894_v5 = vld [vmem:[#allocation8 + $0x1d4] ss:$8 sps:$4 sm:$0xff]  }
 0x299   :  { %3090 = vmatpush1.bf16.msra.mxu0 %v4823_v38  ;;  %3380 = vmatpush1.bf16.msra.mxu1 %v4919_v6  ;;  %v4892_v6 = vld [vmem:[#allocation8 + $0x1d0] ss:$8 sps:$4 sm:$0xff]  }
 0x29a   :  { %3091 = vmatprep.subr.bf16.mxu0 %v4828_v39  ;;  %3381 = vmatprep.subr.bf16.mxu1 %v4924_v9  ;;  %v4897_v9 = vld [vmem:[#allocation8 + $0x1e4] ss:$8 sps:$4 sm:$0xff]  }
 0x29d   :  { %3092 = vmatpush1.bf16.msra.mxu0 %v4826_v40  ;;  %3382 = vmatpush1.bf16.msra.mxu1 %v4922_v11  ;;  %v4895_v11 = vld [vmem:[#allocation8 + $0x1e0] ss:$8 sps:$4 sm:$0xff]  }
 0x29e   :  { %3093 = vmatprep.subr.bf16.mxu0 %v4831_v21  ;;  %3383 = vmatprep.subr.bf16.mxu1 %v4927_v12  ;;  %v4853_v21 = vld [vmem:[#allocation8 + $0x100] ss:$8 sps:$4 sm:$0xff]  }
 0x2a1   :  { %3094 = vmatpush1.bf16.msra.mxu0 %v4829_v41  ;;  %3384 = vmatpush1.bf16.msra.mxu1 %v4925_v13 }
 0x2a2   :  { %3095 = vmatprep.subr.bf16.mxu0 %v4834_v0  ;;  %3385 = vmatprep.subr.bf16.mxu1 %v4930_v26  ;;  %v4858_v0 = vld [vmem:[#allocation8 + $0x114] ss:$8 sps:$4 sm:$0xff]   ;;  %v4939_v26 = vld [vmem:[#allocation10 + $0xc4] ss:$8 sps:$4 sm:$0xff]  }
 0x2a5   :  { %3096 = vmatpush1.bf16.msra.mxu0 %v4832_v42  ;;  %3386 = vmatpush1.bf16.msra.mxu1 %v4928_v15  ;;  %v4937_v15 = vld [vmem:[#allocation10 + $0xc0] ss:$8 sps:$4 sm:$0xff]  }
 0x2a6   :  { %3097 = vmatprep.subr.bf16.mxu0 %v4837_v43  ;;  %3387 = vmatprep.subr.bf16.mxu1 %v4933_v16  ;;  %v4856_v43 = vld [vmem:[#allocation8 + $0x110] ss:$8 sps:$4 sm:$0xff]   ;;  %v4942_v16 = vld [vmem:[#allocation10 + $0xd4] ss:$8 sps:$4 sm:$0xff]  }
 0x2a9   :  { %3098 = vmatpush1.bf16.msra.mxu0 %v4835_v44  ;;  %3388 = vmatpush1.bf16.msra.mxu1 %v4931_v19  ;;  %v4861_v44 = vld [vmem:[#allocation8 + $0x124] ss:$8 sps:$4 sm:$0xff]  }
 0x2aa   :  { %3099 = vmatprep.subr.bf16.mxu0 %v4840_v45  ;;  %3389 = vmatprep.subr.bf16.mxu1 %v4936_v20  ;;  %v4859_v45 = vld [vmem:[#allocation8 + $0x120] ss:$8 sps:$4 sm:$0xff]   ;;  %v4945_v19 = vld [vmem:[#allocation10 + $0xe4] ss:$8 sps:$4 sm:$0xff]  }
 0x2ab   :  { %v4943_v20 = vld [vmem:[#allocation10 + $0xe0] ss:$8 sps:$4 sm:$0xff]  }
 0x2ad   :  { %3100 = vmatpush1.bf16.msra.mxu0 %v4838_v46  ;;  %3390 = vmatpush1.bf16.msra.mxu1 %v4934_v24  ;;  %v4864_v46 = vld [vmem:[#allocation8 + $0x134] ss:$8 sps:$4 sm:$0xff]   ;;  %v2745_v24 = vld [vmem:[%s5661_s6] sm:$0x3] }
 0x2ae   :  { %3101 = vmatprep.subr.bf16.mxu0 %v4843_v47  ;;  %v4862_v47 = vld [vmem:[#allocation8 + $0x130] ss:$8 sps:$4 sm:$0xff]   ;;  %3391 = vmatprep.subr.bf16.mxu1 %v4939_v26  ;;  %v4250_v26 = vld [vmem:[#allocation14] ss:$0 sm:$0xff] }
 0x2b1   :  { %3102 = vmatpush1.bf16.msra.mxu0 %v4841_v48  ;;  %v4867_v48 = vld [vmem:[#allocation8 + $0x144] ss:$8 sps:$4 sm:$0xff]   ;;  %3392 = vmatpush1.bf16.msra.mxu1 %v4937_v15 }
 0x2b2   :  { %3103 = vmatprep.subr.bf16.mxu0 %v4846_v49  ;;  %v4865_v49 = vld [vmem:[#allocation8 + $0x140] ss:$8 sps:$4 sm:$0xff]   ;;  %3393 = vmatprep.subr.bf16.mxu1 %v4942_v16 }
 0x2b5   :  { %3104 = vmatpush1.bf16.msra.mxu0 %v4844_v51  ;;  %v4870_v51 = vld [vmem:[#allocation8 + $0x154] ss:$8 sps:$4 sm:$0xff]   ;;  %3394 = vmatpush1.bf16.msra.mxu1 %v4940_v18 }
 0x2b6   :  { %3105 = vmatprep.subr.bf16.mxu0 %v4849_v52  ;;  %v4868_v52 = vld [vmem:[#allocation8 + $0x150] ss:$8 sps:$4 sm:$0xff]   ;;  %3395 = vmatprep.subr.bf16.mxu1 %v4945_v19 }
 0x2b9   :  { %3106 = vmatpush1.bf16.msra.mxu0 %v4847_v53  ;;  %v4873_v53 = vld [vmem:[#allocation8 + $0x164] ss:$8 sps:$4 sm:$0xff]   ;;  %3396 = vmatpush1.bf16.msra.mxu1 %v4943_v20 }
 0x2ba   :  { %3107 = vmatprep.subr.bf16.mxu0 %v4852_v54  ;;  %v4871_v54 = vld [vmem:[#allocation8 + $0x160] ss:$8 sps:$4 sm:$0xff]  }
 0x2bd   :  { %3108 = vmatpush1.bf16.msra.mxu0 %v4850_v55  ;;  %v4876_v55 = vld [vmem:[#allocation8 + $0x174] ss:$8 sps:$4 sm:$0xff]  }
 0x2be   :  { %3118 = vmatprep.subr.bf16.mxu0 %v4855_v56  ;;  %v4874_v56 = vld [vmem:[#allocation8 + $0x170] ss:$8 sps:$4 sm:$0xff]  }
 0x353   :  { %v2502_v25 = vpop.f32.mrb[8].mxu0  ;;  %v5585_v27 = vpop.f32.mrb[8].mxu1 }
 0x354   :  { %v4365_v28 = vadd.f32 %v2502_v25, %v1048_v22  ;;  %v2504_v29 = vpop.f32.mrb[9].mxu0  ;;  %v2668_v31 = vpop.f32.mrb[9].mxu1  ;;  %v4367_v3 = vadd.f32 %v5585_v27, %v1056_v63  ;;  %v4948_v22 = vld [vmem:[#allocation10 + $0xf4] ss:$8 sps:$4 sm:$0xff]   ;;  %v2750_v25 = vrot.slane %v2745_v24, %v5531_v8  ;;  %v2754_v27 = vrot.slane %v2745_v24, %v5536_v10 }
 0x355   :  { %v4366_v32 = vadd.f32 %v2504_v29, %v1052_v23  ;;  %v4368_v33 = vadd.f32 %v2668_v31, %v1060_v2  ;;  %v2506_v34 = vpop.f32.mrb[10].mxu0  ;;  %v2670_v35 = vpop.f32.mrb[10].mxu1  ;;  %v4946_v23 = vld [vmem:[#allocation10 + $0xf0] ss:$8 sps:$4 sm:$0xff]   ;;  %3397 = vmatprep.subr.bf16.mxu1 %v4948_v22  ;;  %v4949_v2 = vld [vmem:[#allocation13 + $0x40] sm:$0xff]  }
 0x356   :  { %v2507_v36 = vpop.f32.mrb[11].mxu0  ;;  %v2671_v37 = vpop.f32.mrb[11].mxu1  ;;  %4997 = vtanh.f32 %v4365_v28  ;;  %3398 = vmatpush1.bf16.msra.mxu1 %v4946_v23  ;;  %v4978_v24 = vld [vmem:[%s5668_s13 + $0x28] sm:$0xff]  }
 0x357   :  { %4999 = vtanh.f32 %v4366_v32  ;;  %4285 = vmatprep.subr.bf16.mxu1 %v4949_v2  ;;  %v4977_v2 = vld [vmem:[%s5668_s13 + $0x20] sm:$0xff]  }
 0x358   :  { %5001 = vtanh.f32 %v4368_v33 }
 0x359   :  { %5003 = vtanh.f32 %v4367_v3  ;;  %v4966_v3 = vld [vmem:[#allocation16 + $0x8] sm:$0xff]  }
 0x360   :  { %v4998_v14 = vpop.eup %4997 }
 0x361   :  { %v5000_v38 = vpop.eup %4999  ;;  %v2677_v41 = vpack.c.bf16 %v4998_v14, %v4998_v14  ;;  %v4950_v14 = vld [vmem:[#allocation13] sm:$0xff]  }
 0x362   :  { %v5002_v39 = vpop.eup %5001  ;;  %v2678_v40 = vpack.c.bf16 %v5000_v38, %v5000_v38 }
 0x363   :  { %v2680_v42 = vpack.c.bf16 %v5002_v39, %v5002_v39  ;;  %v5004_v12 = vpop.eup %5003  ;;  %v4951_v39 = vld [vmem:[#allocation13 + $0x48] sm:$0xff]  }
 0x364   :  { %3109 = vmatprep.mubr.bf16.mxu0 %v2678_v40  ;;  %v2679_v13 = vpack.c.bf16 %v5004_v12, %v5004_v12  ;;  %v4952_v40 = vld [vmem:[#allocation13 + $0x8] sm:$0xff]   ;;  %v4976_v12 = vld [vmem:[%s5668_s13 + $0x18] sm:$0xff]  }
 0x365   :  { %3110 = vmatmul.mubr.bf16.vlgmr.msra.gmra.mrb[12].mxu0 %v2677_v41  ;;  %v4954_v41 = vld [vmem:[#allocation13 + $0x10] sm:$0xff]  }
 0x366   :  { %3119 = vmatpush1.bf16.msra.mxu0 %v4853_v21  ;;  %3150 = vmatprep.mubr.bf16.mxu0 %v2680_v42  ;;  %v4953_v21 = vld [vmem:[#allocation13 + $0x50] sm:$0xff]   ;;  %v4956_v42 = vld [vmem:[#allocation13 + $0x18] sm:$0xff]  }
 0x367   :  { %3120 = vmatprep.subr.bf16.mxu0 %v4858_v0  ;;  %v4955_v0 = vld [vmem:[#allocation13 + $0x58] sm:$0xff]  }
 0x36a   :  { %3121 = vmatpush1.bf16.msra.mxu0 %v4856_v43  ;;  %v4957_v43 = vld [vmem:[#allocation13 + $0x60] sm:$0xff]  }
 0x36b   :  { %3122 = vmatprep.subr.bf16.mxu0 %v4861_v44  ;;  %v4958_v44 = vld [vmem:[#allocation13 + $0x20] sm:$0xff]  }
 0x36e   :  { %3123 = vmatpush1.bf16.msra.mxu0 %v4859_v45  ;;  %v4959_v45 = vld [vmem:[#allocation13 + $0x68] sm:$0xff]  }
 0x36f   :  { %3124 = vmatprep.subr.bf16.mxu0 %v4864_v46  ;;  %v4960_v46 = vld [vmem:[#allocation13 + $0x28] sm:$0xff]  }
 0x372   :  { %3125 = vmatpush1.bf16.msra.mxu0 %v4862_v47  ;;  %v4961_v47 = vld [vmem:[#allocation13 + $0x70] sm:$0xff]  }
 0x373   :  { %3126 = vmatprep.subr.bf16.mxu0 %v4867_v48  ;;  %v4962_v48 = vld [vmem:[#allocation13 + $0x30] sm:$0xff]  }
 0x376   :  { %3127 = vmatpush1.bf16.msra.mxu0 %v4865_v49  ;;  %v4963_v49 = vld [vmem:[#allocation13 + $0x78] sm:$0xff]  }
 0x377   :  { %3128 = vmatprep.subr.bf16.mxu0 %v4870_v51  ;;  %v4964_v51 = vld [vmem:[#allocation13 + $0x38] sm:$0xff]  }
 0x37a   :  { %3129 = vmatpush1.bf16.msra.mxu0 %v4868_v52  ;;  %v5292_v52 = vmov 0.0  }
 0x37b   :  { %3130 = vmatprep.subr.bf16.mxu0 %v4873_v53  ;;  %v3195_v53 = vld [vmem:[#allocation11] sm:$0x3] }
 0x37e   :  { %3131 = vmatpush1.bf16.msra.mxu0 %v4871_v54  ;;  %v3200_v54 = vrot.slane %v3195_v53, %v5531_v8  ;;  %v4967_v8 = vld [vmem:[#allocation16 + $0x10] sm:$0xff]  }
 0x37f   :  { %3132 = vmatprep.subr.bf16.mxu0 %v4876_v55  ;;  %v3204_v55 = vrot.slane %v3195_v53, %v5536_v10  ;;  %v4968_v10 = vld [vmem:[#allocation16 + $0x18] sm:$0xff]  }
 0x382   :  { %3133 = vmatpush1.bf16.msra.mxu0 %v4874_v56 }
 0x383   :  { %3134 = vmatprep.subr.bf16.mxu0 %v4879_v57 }
 0x386   :  { %3135 = vmatpush1.bf16.msra.mxu0 %v4877_v58 }
 0x387   :  { %3136 = vmatprep.subr.bf16.mxu0 %v4882_v59 }
 0x38a   :  { %3137 = vmatpush1.bf16.msra.mxu0 %v4880_v60 }
 0x38b   :  { %3138 = vmatprep.subr.bf16.mxu0 %v4885_v50 }
 0x38e   :  { %3139 = vmatpush1.bf16.msra.mxu0 %v4883_v61 }
 0x38f   :  { %3140 = vmatprep.subr.bf16.mxu0 %v4888_v62 }
 0x392   :  { %3141 = vmatpush1.bf16.msra.mxu0 %v4886_v1  ;;  %v4965_v1 = vld [vmem:[#allocation16] sm:$0xff]  }
 0x393   :  { %3142 = vmatprep.subr.bf16.mxu0 %v4891_v30 }
 0x396   :  { %3143 = vmatpush1.bf16.msra.mxu0 %v4889_v4  ;;  %v4969_v4 = vld [vmem:[#allocation16 + $0x20] sm:$0xff]  }
 0x397   :  { %3144 = vmatprep.subr.bf16.mxu0 %v4894_v5  ;;  %v4970_v5 = vld [vmem:[#allocation16 + $0x28] sm:$0xff]  }
 0x39a   :  { %3145 = vmatpush1.bf16.msra.mxu0 %v4892_v6  ;;  %v4971_v6 = vld [vmem:[#allocation16 + $0x30] sm:$0xff]  }
 0x39b   :  { %3146 = vmatprep.subr.bf16.mxu0 %v4897_v9  ;;  %v4972_v9 = vld [vmem:[#allocation16 + $0x38] sm:$0xff]  }
 0x39e   :  { %3147 = vmatpush1.bf16.msra.mxu0 %v4895_v11  ;;  %v4973_v11 = vld [vmem:[%s5668_s13] sm:$0xff]  }
 0x39f   :  { %3148 = vmatprep.subr.bf16.mxu0 %v4900_v7  ;;  %v4974_v7 = vld [vmem:[%s5668_s13 + $0x8] sm:$0xff]  }
 0x3a2   :  { %3149 = vmatpush1.bf16.msra.mxu0 %v4898_v17  ;;  %v4975_v17 = vld [vmem:[%s5668_s13 + $0x10] sm:$0xff]  }
 0x3a3   :  { %4345 = vmatprep.subr.bf16.mxu0 %v5292_v52 }
 0x3a5   :  { %3151 = vmatmul.mubr.bf16.vlgmr.msra.gmra.mrb[12].mxu0 %v2679_v13 }
 0x3a6   :  { %4361 = vmatprep.mubr.msk.bf16.mxu0 %vm5293_vm0, %v5292_v52  ;;  %4346 = vmatpush3.bf16.msra.mxu0 %v4973_v11 }
 0x3a7   :  { %4347 = vmatprep.subr.bf16.mxu0 %v5292_v52 }
 0x3aa   :  { %4348 = vmatpush3.bf16.msra.mxu0 %v4974_v7 }
 0x3ab   :  { %4349 = vmatprep.subr.bf16.mxu0 %v5292_v52 }
 0x3ae   :  { %4350 = vmatpush3.bf16.msra.mxu0 %v4975_v17 }
 0x3af   :  { %4351 = vmatprep.subr.bf16.mxu0 %v5292_v52 }
 0x3b2   :  { %4352 = vmatpush3.bf16.msra.mxu0 %v4976_v12 }
 0x3b3   :  { %4353 = vmatprep.subr.bf16.mxu0 %v5292_v52 }
 0x3b6   :  { %4354 = vmatpush3.bf16.msra.mxu0 %v4977_v2 }
 0x3b7   :  { %4355 = vmatprep.subr.bf16.mxu0 %v5292_v52 }
 0x3ba   :  { %4356 = vmatpush3.bf16.msra.mxu0 %v4978_v24 }
 0x3bb   :  { %4357 = vmatprep.subr.bf16.mxu0 %v5292_v52 }
 0x478   :  { %v3152_v28 = vpop.f32.mrb[12].mxu0 }
 0x479   :  { %v4369_v29 = vadd.f32 %v3152_v28, %v2750_v25  ;;  %v3154_v31 = vpop.f32.mrb[13].mxu0  ;;  %v4979_v25 = vld [vmem:[%s5668_s13 + $0x30] sm:$0xff]   ;;  %v4267_v28 = vld [vmem:[#allocation17] ss:$0 sm:$0xff] }
 0x47a   :  { %v4370_v32 = vadd.f32 %v3154_v31, %v2754_v27  ;;  %v3156_v33 = vpop.f32.mrb[14].mxu0  ;;  %4358 = vmatpush3.bf16.msra.mxu0 %v4979_v25  ;;  %v4980_v27 = vld [vmem:[%s5668_s13 + $0x38] sm:$0xff]   ;;  %s5237_s13 = scalar_lea.vmem %s3821_s21, 128 }
 0x47b   :  { %5005 = vtanh.f32 %v4369_v29  ;;  %v3157_v34 = vpop.f32.mrb[15].mxu0  ;;  %4359 = vmatprep.subr.bf16.mxu0 %v5292_v52  ;;  %p5238_p10 = scmp.ne.s32.totalorder %s3821_s21, %s5237_s13  ;;  %p5243_p12 = scmp.lt.s32.totalorder %s5237_s13, %s5237_s13 }
 0x47c   :  { %5007 = vtanh.f32 %v4370_v32 }
 0x47d   :  { %p5244_p13 = por %p5243_p12, %p5242_p11 }
 0x47e   :  { %4360 = vmatpush3.bf16.msra.mxu0 %v4980_v27 }
 0x47f   :  { %p5245_p0 = pnand %p5244_p13, %p5238_p10 }
 0x485   :  { %v5006_v35 = vpop.eup %5005 }
 0x486   :  { %v5008_v36 = vpop.eup %5007  ;;  %v3161_v38 = vpack.c.bf16 %v5006_v35, %v5006_v35 }
 0x487   :  { %v3162_v37 = vpack.c.bf16 %v5008_v36, %v5008_v36 }
 0x489   :  { %3399 = vmatprep.mubr.bf16.mxu1 %v3162_v37  ;;  %v4276_v37 = vld [vmem:[%s5669_s14] ss:$0 sm:$0xff] }
 0x48a   :  { %3400 = vmatmul.mubr.bf16.vlgmr.msra.gmra.mrb[12].mxu1 %v3161_v38 }
 0x48b   :  { %4286 = vmatpush3.bf16.msra.mxu1 %v4950_v14 }
 0x48c   :  { %4287 = vmatprep.subr.bf16.mxu1 %v4951_v39 }
 0x48f   :  { %4288 = vmatpush3.bf16.msra.mxu1 %v4952_v40 }
 0x490   :  { %4289 = vmatprep.subr.bf16.mxu1 %v4953_v21 }
 0x493   :  { %4290 = vmatpush3.bf16.msra.mxu1 %v4954_v41 }
 0x494   :  { %4291 = vmatprep.subr.bf16.mxu1 %v4955_v0 }
 0x497   :  { %4292 = vmatpush3.bf16.msra.mxu1 %v4956_v42 }
 0x498   :  { %4293 = vmatprep.subr.bf16.mxu1 %v4957_v43 }
 0x49b   :  { %4294 = vmatpush3.bf16.msra.mxu1 %v4958_v44 }
 0x49c   :  { %4295 = vmatprep.subr.bf16.mxu1 %v4959_v45 }
 0x49f   :  { %4296 = vmatpush3.bf16.msra.mxu1 %v4960_v46 }
 0x4a0   :  { %4297 = vmatprep.subr.bf16.mxu1 %v4961_v47 }
 0x4a3   :  { %4298 = vmatpush3.bf16.msra.mxu1 %v4962_v48 }
 0x4a4   :  { %4299 = vmatprep.subr.bf16.mxu1 %v4963_v49 }
 0x4a7   :  { %4300 = vmatpush3.bf16.msra.mxu1 %v4964_v51 }
 0x4a8   :  { %4325 = vmatprep.subr.bf16.mxu1 %v5292_v52 }
 0x55d   :  { %v3401_v56 = vpop.f32.mrb[12].mxu1 }
 0x55e   :  { %v3402_v57 = vadd.f32 %v3401_v56, %v3200_v54  ;;  %v3403_v58 = vpop.f32.mrb[13].mxu1 }
 0x55f   :  { %v3404_v59 = vadd.f32 %v3403_v58, %v3204_v55  ;;  %v3405_v60 = vpop.f32.mrb[14].mxu1 }
 0x560   :  { %5009 = vtanh.f32 %v3402_v57  ;;  %v3406_v50 = vpop.f32.mrb[15].mxu1 }
 0x561   :  { %5011 = vtanh.f32 %v3404_v59 }
 0x56a   :  { %v5010_v61 = vpop.eup %5009 }
 0x56b   :  { %v5012_v62 = vpop.eup %5011  ;;  %v3410_v30 = vpack.c.bf16 %v5010_v61, %v5010_v61 }
 0x56c   :  { %v3411_v63 = vpack.c.bf16 %v5012_v62, %v5012_v62 }
 0x56e   :  { %3579 = vmatprep.mubr.bf16.mxu1 %v3411_v63 }
 0x56f   :  { %3580 = vmatmul.mubr.bf16.vlgmr.msra.gmra.mrb[16].mxu1 %v3410_v30 }
 0x570   :  { %4326 = vmatpush3.bf16.msra.mxu1 %v4965_v1  ;;  %4341 = vmatprep.mubr.msk.bf16.mxu1 %vm5293_vm0, %v5292_v52 }
 0x571   :  { %4327 = vmatprep.subr.bf16.mxu1 %v5292_v52 }
 0x574   :  { %4328 = vmatpush3.bf16.msra.mxu1 %v4966_v3 }
 0x575   :  { %4329 = vmatprep.subr.bf16.mxu1 %v5292_v52 }
 0x578   :  { %4330 = vmatpush3.bf16.msra.mxu1 %v4967_v8 }
 0x579   :  { %4331 = vmatprep.subr.bf16.mxu1 %v5292_v52 }
 0x57c   :  { %4332 = vmatpush3.bf16.msra.mxu1 %v4968_v10 }
 0x57d   :  { %4333 = vmatprep.subr.bf16.mxu1 %v5292_v52 }
 0x580   :  { %4334 = vmatpush3.bf16.msra.mxu1 %v4969_v4 }
 0x581   :  { %4335 = vmatprep.subr.bf16.mxu1 %v5292_v52 }
 0x584   :  { %4336 = vmatpush3.bf16.msra.mxu1 %v4970_v5 }
 0x585   :  { %4337 = vmatprep.subr.bf16.mxu1 %v5292_v52 }
 0x588   :  { %4338 = vmatpush3.bf16.msra.mxu1 %v4971_v6 }
 0x589   :  { %4339 = vmatprep.subr.bf16.mxu1 %v5292_v52 }
 0x58c   :  { %4340 = vmatpush3.bf16.msra.mxu1 %v4972_v9 }
 0x642   :  { %v4301_v13 = vpop.f32.mrb[16].mxu1 }
 0x643   :  { %v4302_v15 = vpop.f32.mrb[17].mxu1 }
 0x644   :  { %v4303_v16 = vadd.f32 %v4302_v15, %v4301_v13  ;;  %v4304_v18 = vpop.f32.mrb[18].mxu1 }
 0x645   :  { %v4305_v19 = vpop.f32.mrb[19].mxu1 }
 0x646   :  { %v3582_v20 = vadd.f32 %v4303_v16, %v4250_v26 }
 0x648   :  { %5013 = vtanh.f32 %v3582_v20 }
 0x652   :  { %v5014_v22 = vpop.eup %5013 }
 0x653   :  { %v3588_v23 = vpack.c.bf16 %v5014_v22, %v5014_v22 }
 0x655   :  { %4342 = vmatmul.mubr.bf16.vlgmr.msra.gmra.mrb[20].mxu1 %v3588_v23 }
 0x728   :  { %v3694_v29 = vpop.f32.mrb[20].mxu1 }
 0x729   :  { %v3695_v31 = vadd.f32 %v4267_v28, %v3694_v29  ;;  %v4343_v32 = vpop.f32.mrb[21].mxu1 }
 0x72a   :  { %v3697_v33 = vpop.f32.mrb[22].mxu1 }
 0x72b   :  { %5015 = vtanh.f32 %v3695_v31  ;;  %v4344_v34 = vpop.f32.mrb[23].mxu1 }
 0x735   :  { %v5016_v35 = vpop.eup %5015 }
 0x736   :  { %v3701_v36 = vpack.c.bf16 %v5016_v35, %v5016_v35 }
 0x738   :  { %4362 = vmatmul.mubr.bf16.vlgmr.msra.gmra.mrb[16].mxu0 %v3701_v36 }
 0x80b   :  { %v3807_v14 = vpop.f32.mrb[16].mxu0 }
 0x80c   :  { %v3808_v38 = vadd.f32 %v4276_v37, %v3807_v14  ;;  %v4363_v39 = vpop.f32.mrb[17].mxu0 }
 0x80d   :  { %v3810_v40 = vpop.f32.mrb[18].mxu0 }
 0x80e   :  { %3813 = vst [vmem:[#allocation19] sm:$0xff] %v3808_v38  ;;  %v4364_v21 = vpop.f32.mrb[19].mxu0 }
 0x80f   :  { %5248 = shalt.err (!%p5245_p0)
}
 0x810   :  { %s5249_s14 = scalar_lea.hbm %s5670_s15, 128 }
 0x811   :  { %p5250_p1 = scmp.ne.s32.totalorder %s5670_s15, %s5249_s14  ;;  %p5253_p2 = scmp.lt.u32.totalorder %s5249_s14, %s5670_s15 }
 0x813   :  { %p5255_p3 = pnand %p5253_p2, %p5250_p1 }
 0x815   :  { %5258 = shalt.err (!%p5255_p3)
}
 0x816   :  { %3823 = dma.vmem_to_hbm [thread:$0]  %s3821_s21, 128, %s5670_s15, [#allocation4]  }
 0x817   :  { %5271 = dma.done.wait [#allocation4], 128  }
 0x818   :  { %5272 = vsyncadd [#allocation4], 4294967168 }
 0x819   :  { %3827 = vsyncpa [#allocation3], 1 }
 0x81a   :  { %3828 = vsyncpa [#allocation6], 1 }
 0x81b   :  { %3829 = vsyncpa [#allocation9], 1 }
 0x81c   :  { %3830 = vsyncpa [#allocation12], 1 }
 0x81d   :  { %3831 = vsyncpa [#allocation15], 1 }
 0x81e   :  { %3832 = vsyncpa [#allocation18], 1 }
 0x81f   :  { %3833 = vsyncpa [#allocation4], 1 }

</bundles_post_ra>
